<compile_context>
chip_gen: v7x
topology: tpu7x:2x2x1
jax: 0.10.0
libtpu: 0.0.40
codegen_flags: <defaults>
</compile_context>

<pallas_src>
import functools

import jax
import jax.numpy as jnp
from jax import lax
from jax.experimental import pallas as pl
from jax.experimental.pallas import tpu as pltpu

_LANE = 128
_EPS = 1e-5
_VMEM_LIMIT = 48 * 1024 * 1024   # explicit scoped-VMEM budget; safe on v5e/v6e/v7x


def _round_up(v, m):
    return (v + m - 1) // m * m


def _pad2d(a, rows, cols):
    r, c = a.shape
    return jnp.pad(a, ((0, rows - r), (0, cols - c)))


def _pick_tile(n):
    for t in (512, 256, 128):
        if n % t == 0:
            return t
    return n  # n is always a multiple of 128 here


# --------------------------------------------------------------------------------------
# Kernels
# --------------------------------------------------------------------------------------

def _encode_transform_kernel(x_ref, wenc_ref, benc_ref, wcat_ref, hwl_ref, hwr_ref):
    # node_encoder (Linear) + fused lin_l|lin_r weight matmul (256-lane-wide MXU output).
    h0 = jnp.dot(x_ref[...], wenc_ref[...],
                 preferred_element_type=jnp.float32) + benc_ref[...]
    hw = jnp.dot(h0.astype(jnp.bfloat16), wcat_ref[...],
                 preferred_element_type=jnp.float32)
    d = hwl_ref.shape[-1]
    hwl_ref[...] = hw[:, :d].astype(jnp.bfloat16)   # operand of the A matmul
    hwr_ref[...] = hw[:, d:]                        # self term, kept f32


def _bn_transform_kernel(z_ref, stats_ref, gamma_ref, beta_ref, wcat_ref, hwl_ref, hwr_ref):
    # Previous layer's folded BatchNorm + ReLU, then the fused lin_l|lin_r weight matmul.
    d = gamma_ref.shape[-1]
    stats = stats_ref[...]                          # [1, 2D] = [mean | mean(z^2)]
    mean = stats[:, :d]
    var = jnp.maximum(stats[:, d:] - mean * mean, jnp.float32(0.0))
    scale = gamma_ref[...] * lax.rsqrt(var + jnp.float32(_EPS))
    shift = beta_ref[...] - mean * scale
    h = jnp.maximum(z_ref[...] * scale + shift, jnp.float32(0.0))
    hw = jnp.dot(h.astype(jnp.bfloat16), wcat_ref[...],
                 preferred_element_type=jnp.float32)
    hwl_ref[...] = hw[:, :d].astype(jnp.bfloat16)
    hwr_ref[...] = hw[:, d:]


def _agg_kernel(a_ref, hwl_ref, hwr_ref, invdeg_ref, bias_ref, z_ref, acc_ref):
    # z = (1/deg) * (A_counts @ (h @ w_l)) + h @ w_r + b, accumulated over K blocks of A.
    k = pl.program_id(1)

    @pl.when(k == 0)
    def _():
        acc_ref[...] = jnp.zeros_like(acc_ref)

    acc_ref[...] += jnp.dot(a_ref[...], hwl_ref[...],
                            preferred_element_type=jnp.float32)

    @pl.when(k == pl.num_programs(1) - 1)
    def _():
        z_ref[...] = acc_ref[...] * invdeg_ref[...] + hwr_ref[...] + bias_ref[...]


def _bn_stats_kernel(bnrow_ref, z_ref, stats_ref, acc_ref):
    # Fused BatchNorm batch statistics: one masked [1,N] @ [N, 2D] dot over [z | z*z].
    i = pl.program_id(0)

    @pl.when(i == 0)
    def _():
        acc_ref[...] = jnp.zeros_like(acc_ref)

    z = z_ref[...]
    acc_ref[...] += jnp.dot(bnrow_ref[...], jnp.concatenate([z, z * z], axis=1),
                            preferred_element_type=jnp.float32)

    @pl.when(i == pl.num_programs(0) - 1)
    def _():
        stats_ref[...] = acc_ref[...]


def _pool_kernel(num_graphs, z_ref, stats_ref, gamma_ref, beta_ref, pmask_ref,
                 invcnt_ref, maskT_ref, out_ref, mean_acc, max_acc):
    # Last layer's BN + ReLU fused in, then global mean pool (MXU) and masked max pool.
    i = pl.program_id(0)

    @pl.when(i == 0)
    def _():
        mean_acc[...] = jnp.zeros_like(mean_acc)
        max_acc[...] = jnp.zeros_like(max_acc)

    d = gamma_ref.shape[-1]
    stats = stats_ref[...]
    mean = stats[:, :d]
    var = jnp.maximum(stats[:, d:] - mean * mean, jnp.float32(0.0))
    scale = gamma_ref[...] * lax.rsqrt(var + jnp.float32(_EPS))
    shift = beta_ref[...] - mean * scale
    h = jnp.maximum(z_ref[...] * scale + shift, jnp.float32(0.0))

    # mean pool: binary membership matmul, 1/count applied once at the final store.
    mean_acc[...] += jnp.dot(pmask_ref[...], h.astype(jnp.bfloat16),
                             preferred_element_type=jnp.float32)

    # max pool: h >= 0 after ReLU, so a multiplicative 0/1 mask is exact.
    maskT = maskT_ref[...]                          # [TM, G] f32
    # TODO(synk): for large graph counts replace this unrolled loop with lax.fori_loop.
    blk = jnp.concatenate(
        [jnp.max(h * maskT[:, g:g + 1], axis=0, keepdims=True) for g in range(num_graphs)],
        axis=0)                                     # [G, D]
    max_acc[...] = jnp.maximum(max_acc[...], blk)

    @pl.when(i == pl.num_programs(0) - 1)
    def _():
        out_ref[...] = jnp.concatenate(
            [mean_acc[...] * invcnt_ref[...], max_acc[...]], axis=1)


# --------------------------------------------------------------------------------------
# Forward wrapper
# --------------------------------------------------------------------------------------

@functools.partial(jax.jit, static_argnames=("emb_dim", "n_layers", "num_graphs"))
def gnn_forward(x, edge_index, batch, params, *, emb_dim, n_layers, num_graphs):
    N, raw_dim = x.shape
    input_dim = params["w_enc"].shape[1]

    n_pad = _round_up(max(N, _LANE), _LANE)
    raw_pad = _round_up(max(raw_dim, _LANE), _LANE)
    in_pad = _round_up(max(input_dim, _LANE), _LANE)
    d_pad = _round_up(max(emb_dim, _LANE), _LANE)
    d2 = 2 * d_pad

    tm = _pick_tile(n_pad)
    tk = _pick_tile(n_pad)
    n_blocks = n_pad // tm

    # ---- dense operators -------------------------------------------------------------
    # TODO(synk): for large graphs replace the dense [Np,Np] adjacency with a
    # scalar-prefetch CSR / neighbor-block gather and cache this construction when the
    # graph topology is static across calls.
    src, dst = edge_index[0], edge_index[1]
    a_cnt = jnp.zeros((n_pad, n_pad), jnp.float32).at[dst, src].add(1.0)
    deg = jnp.sum(a_cnt, axis=1, keepdims=True)
    inv_deg = (1.0 / jnp.maximum(deg, 1.0)).astype(jnp.float32)          # [Np, 1] exact f32
    a_cnt = a_cnt.astype(jnp.bfloat16)                                   # small counts, exact

    onehot = (batch[None, :] == jnp.arange(num_graphs)[:, None]).astype(jnp.float32)
    counts = jnp.sum(onehot, axis=1, keepdims=True)
    inv_cnt = (1.0 / jnp.maximum(counts, 1.0)).astype(jnp.float32)       # [G, 1]
    pmask = _pad2d(onehot, num_graphs, n_pad).astype(jnp.bfloat16)       # [G, Np] binary
    mask_t = _pad2d(jnp.transpose(onehot), n_pad, num_graphs)            # [Np, G] f32 binary

    bn_row = jnp.where(jnp.arange(n_pad)[None, :] < N,
                       jnp.float32(1.0 / N), jnp.float32(0.0))           # [1, Np]

    x_pad = _pad2d(x.astype(jnp.float32), n_pad, raw_pad).astype(jnp.bfloat16)
    w_enc = _pad2d(params["w_enc"], raw_pad, in_pad).astype(jnp.bfloat16)
    b_enc = _pad2d(params["b_enc"], 1, in_pad).astype(jnp.float32)

    wcats, b_ls, gammas, betas = [], [], [], []
    for i in range(n_layers):
        lp = params["layers"][i]
        in_ch_pad = in_pad if i == 0 else d_pad
        # Reassociated fusion: concat along the OUTPUT axis -> hw = h @ [w_l | w_r].
        wcats.append(jnp.concatenate(
            [_pad2d(lp["w_l"], in_ch_pad, d_pad),
             _pad2d(lp["w_r"], in_ch_pad, d_pad)], axis=1).astype(jnp.bfloat16))
        b_ls.append(_pad2d(lp["b_l"], 1, d_pad).astype(jnp.float32))
        gammas.append(_pad2d(lp["gamma"], 1, d_pad).astype(jnp.float32))
        betas.append(_pad2d(lp["beta"], 1, d_pad).astype(jnp.float32))

    row_par = pltpu.CompilerParams(dimension_semantics=("parallel",),
                                   vmem_limit_bytes=_VMEM_LIMIT)
    row_seq = pltpu.CompilerParams(dimension_semantics=("arbitrary",),
                                   vmem_limit_bytes=_VMEM_LIMIT)
    mm_par = pltpu.CompilerParams(dimension_semantics=("parallel", "arbitrary"),
                                  vmem_limit_bytes=_VMEM_LIMIT)

    hw_shapes = (jax.ShapeDtypeStruct((n_pad, d_pad), jnp.bfloat16),
                 jax.ShapeDtypeStruct((n_pad, d_pad), jnp.float32))

    # ---- per-stage pallas_call wrappers ------------------------------------------------
    def run_encode_transform():
        return pl.pallas_call(
            _encode_transform_kernel,
            out_shape=hw_shapes,
            grid=(n_blocks,),
            in_specs=[
                pl.BlockSpec((tm, raw_pad), lambda i: (i, 0)),
                pl.BlockSpec((raw_pad, in_pad), lambda i: (0, 0)),
                pl.BlockSpec((1, in_pad), lambda i: (0, 0)),
                pl.BlockSpec((in_pad, d2), lambda i: (0, 0)),
            ],
            out_specs=[
                pl.BlockSpec((tm, d_pad), lambda i: (i, 0)),
                pl.BlockSpec((tm, d_pad), lambda i: (i, 0)),
            ],
            compiler_params=row_par,
        )(x_pad, w_enc, b_enc, wcats[0])

    def run_agg(hw_l, hw_r, bias):
        return pl.pallas_call(
            _agg_kernel,
            out_shape=jax.ShapeDtypeStruct((n_pad, d_pad), jnp.float32),
            grid=(n_pad // tm, n_pad // tk),
            in_specs=[
                pl.BlockSpec((tm, tk), lambda i, k: (i, k)),      # A streamed, double-buffered
                pl.BlockSpec((tk, d_pad), lambda i, k: (k, 0)),
                pl.BlockSpec((tm, d_pad), lambda i, k: (i, 0)),
                pl.BlockSpec((tm, 1), lambda i, k: (i, 0)),
                pl.BlockSpec((1, d_pad), lambda i, k: (0, 0)),
            ],
            out_specs=pl.BlockSpec((tm, d_pad), lambda i, k: (i, 0)),
            scratch_shapes=[pltpu.VMEM((tm, d_pad), jnp.float32)],
            compiler_params=mm_par,
        )(a_cnt, hw_l, hw_r, inv_deg, bias)

    def run_stats(z):
        return pl.pallas_call(
            _bn_stats_kernel,
            out_shape=jax.ShapeDtypeStruct((1, d2), jnp.float32),
            grid=(n_blocks,),
            in_specs=[
                pl.BlockSpec((1, tm), lambda i: (0, i)),
                pl.BlockSpec((tm, d_pad), lambda i: (i, 0)),
            ],
            out_specs=pl.BlockSpec((1, d2), lambda i: (0, 0)),
            scratch_shapes=[pltpu.VMEM((1, d2), jnp.float32)],
            compiler_params=row_seq,
        )(bn_row, z)

    def run_bn_transform(z, stats, gamma, beta, wcat):
        return pl.pallas_call(
            _bn_transform_kernel,
            out_shape=hw_shapes,
            grid=(n_blocks,),
            in_specs=[
                pl.BlockSpec((tm, d_pad), lambda i: (i, 0)),
                pl.BlockSpec((1, d2), lambda i: (0, 0)),
                pl.BlockSpec((1, d_pad), lambda i: (0, 0)),
                pl.BlockSpec((1, d_pad), lambda i: (0, 0)),
                pl.BlockSpec((d_pad, d2), lambda i: (0, 0)),
            ],
            out_specs=[
                pl.BlockSpec((tm, d_pad), lambda i: (i, 0)),
                pl.BlockSpec((tm, d_pad), lambda i: (i, 0)),
            ],
            compiler_params=row_par,
        )(z, stats, gamma, beta, wcat)

    def run_pool(z, stats, gamma, beta):
        return pl.pallas_call(
            functools.partial(_pool_kernel, num_graphs),
            out_shape=jax.ShapeDtypeStruct((num_graphs, d2), jnp.float32),
            grid=(n_blocks,),
            in_specs=[
                pl.BlockSpec((tm, d_pad), lambda i: (i, 0)),
                pl.BlockSpec((1, d2), lambda i: (0, 0)),
                pl.BlockSpec((1, d_pad), lambda i: (0, 0)),
                pl.BlockSpec((1, d_pad), lambda i: (0, 0)),
                pl.BlockSpec((num_graphs, tm), lambda i: (0, i)),
                pl.BlockSpec((num_graphs, 1), lambda i: (0, 0)),
                pl.BlockSpec((tm, num_graphs), lambda i: (i, 0)),
            ],
            out_specs=pl.BlockSpec((num_graphs, d2), lambda i: (0, 0)),
            scratch_shapes=[pltpu.VMEM((num_graphs, d_pad), jnp.float32),
                            pltpu.VMEM((num_graphs, d_pad), jnp.float32)],
            compiler_params=row_seq,
        )(z, stats, gamma, beta, pmask, inv_cnt, mask_t)

    # ---- forward pipeline --------------------------------------------------------------
    hw_l, hw_r = run_encode_transform()
    z = None
    stats = None
    for l in range(n_layers):
        z = run_agg(hw_l, hw_r, b_ls[l])
        stats = run_stats(z)
        if l + 1 < n_layers:
            hw_l, hw_r = run_bn_transform(z, stats, gammas[l], betas[l], wcats[l + 1])

    out = run_pool(z, stats, gammas[-1], betas[-1])

    if emb_dim == d_pad:
        return out
    return jnp.concatenate([out[:, :emb_dim], out[:, d_pad:d_pad + emb_dim]], axis=1)


def init_params(key, raw_dim, input_dim, emb_dim, n_layers):
    """Deterministic synthetic parameters (shapes match the torch module)."""
    keys = jax.random.split(key, 2 + 4 * n_layers)
    params = {
        "w_enc": 0.1 * jax.random.normal(keys[0], (raw_dim, input_dim), jnp.float32),
        "b_enc": 0.1 * jax.random.normal(keys[1], (1, input_dim), jnp.float32),
        "layers": [],
    }
    for i in range(n_layers):
        in_ch = input_dim if i == 0 else emb_dim
        k = keys[2 + 4 * i: 2 + 4 * (i + 1)]
        params["layers"].append({
            "w_l": 0.1 * jax.random.normal(k[0], (in_ch, emb_dim), jnp.float32),
            "b_l": 0.1 * jax.random.normal(k[1], (1, emb_dim), jnp.float32),
            "w_r": 0.1 * jax.random.normal(k[2], (in_ch, emb_dim), jnp.float32),
            "gamma": 1.0 + 0.05 * jax.random.normal(k[3], (1, emb_dim), jnp.float32),
            "beta": jnp.zeros((1, emb_dim), jnp.float32),
        })
    return params
    # TODO(synk): SAGPooling (pool1/pool2) and dropout are constructed in __init__ but
    # never used in forward(); both skipped.


if __name__ == "__main__":
    RAW_DIM = 16       # raw node-feature dim fed to node_encoder
    INPUT_DIM = 32     # node_encoder output == SAGEConv layer-0 in_channels
    EMB_DIM = 128
    N_LAYERS = 4
    N_NODES = 64
    N_EDGES = 256
    N_GRAPHS = 2

    root = jax.random.PRNGKey(0)
    k_x, k_e, k_p = jax.random.split(root, 3)

    x = jax.random.normal(k_x, (N_NODES, RAW_DIM), jnp.float32)
    edge_index = jax.random.randint(k_e, (2, N_EDGES), 0, N_NODES, dtype=jnp.int32)
    batch = jnp.concatenate([
        jnp.zeros((N_NODES // 2,), jnp.int32),
        jnp.ones((N_NODES - N_NODES // 2,), jnp.int32),
    ])

    params = init_params(k_p, RAW_DIM, INPUT_DIM, EMB_DIM, N_LAYERS)

    out = gnn_forward(x, edge_index, batch, params,
                      emb_dim=EMB_DIM, n_layers=N_LAYERS, num_graphs=N_GRAPHS)
    jax.block_until_ready(out)
    assert out.shape == (N_GRAPHS, 2 * EMB_DIM), out.shape
    print("KERNEL_OK")
</pallas_src>

<mosaic_0001>
module attributes {stable_mosaic.version = 11 : i64} {
  func.func private @main(%arg0: i32) attributes {dimension_semantics = [#tpu.dimension_semantics<core_parallel>], iteration_bounds = array<i64: 2>, tpu.core_type = #tpu.core_type<sc_scalar_subcore>, window_params = []} {
    return
  }
}

module attributes {stable_mosaic.version = 11 : i64} {
  func.func private @main(%arg0: i32) attributes {dimension_semantics = [#tpu.dimension_semantics<core_parallel>], iteration_bounds = array<i64: 2>, tpu.core_type = #tpu.core_type<sc_scalar_subcore>, window_params = []} {
    return
  }
}

module attributes {stable_mosaic.version = 11 : i64} {
  func.func @_encode_transform_kernel(%arg0: i32, %arg1: memref<128x128xbf16, #tpu.memory_space<vmem>>, %arg2: memref<128x128xbf16, #tpu.memory_space<vmem>>, %arg3: memref<1x128xf32, #tpu.memory_space<vmem>>, %arg4: memref<128x256xbf16, #tpu.memory_space<vmem>>, %arg5: memref<128x128xbf16, #tpu.memory_space<vmem>>, %arg6: memref<128x128xf32, #tpu.memory_space<vmem>>) attributes {dimension_semantics = [#tpu.dimension_semantics<parallel>], iteration_bounds = array<i64: 1>, scalar_prefetch = 0 : i64, scratch_operands = 0 : i64, tpu.core_type = #tpu.core_type<tc>, window_params = [{transform_indices = @transform_0, window_bounds = array<i64: 128, 128>}, {pipeline_mode = #tpu.pipeline_mode<synchronous>, transform_indices = @transform_1, window_bounds = array<i64: 128, 128>}, {pipeline_mode = #tpu.pipeline_mode<synchronous>, transform_indices = @transform_2, window_bounds = array<i64: 1, 128>}, {pipeline_mode = #tpu.pipeline_mode<synchronous>, transform_indices = @transform_3, window_bounds = array<i64: 128, 256>}, {transform_indices = @transform_4, window_bounds = array<i64: 128, 128>}, {transform_indices = @transform_5, window_bounds = array<i64: 128, 128>}]} {
    %c0 = arith.constant 0 : index
    %c0_0 = arith.constant 0 : index
    %0 = vector.load %arg1[%c0, %c0_0] : memref<128x128xbf16, #tpu.memory_space<vmem>>, vector<128x128xbf16>
    %c0_1 = arith.constant 0 : index
    %c0_2 = arith.constant 0 : index
    %1 = vector.load %arg2[%c0_1, %c0_2] : memref<128x128xbf16, #tpu.memory_space<vmem>>, vector<128x128xbf16>
    %cst = arith.constant dense<0.000000e+00> : vector<128x128xf32>
    %2 = tpu.matmul %0, %1, %cst {dimension_numbers = #tpu.dot_dimension_numbers<[1], [0], [0], [1], [0, 0, 1, 1], [], []>} : vector<128x128xbf16>, vector<128x128xbf16>, vector<128x128xf32> -> vector<128x128xf32>
    %c0_3 = arith.constant 0 : index
    %c0_4 = arith.constant 0 : index
    %3 = vector.load %arg3[%c0_3, %c0_4] : memref<1x128xf32, #tpu.memory_space<vmem>>, vector<1x128xf32>
    %4 = vector.broadcast %3 : vector<1x128xf32> to vector<128x128xf32>
    %5 = arith.addf %2, %4 : vector<128x128xf32>
    %6 = arith.truncf %5 : vector<128x128xf32> to vector<128x128xbf16>
    %c0_5 = arith.constant 0 : index
    %c0_6 = arith.constant 0 : index
    %7 = vector.load %arg4[%c0_5, %c0_6] : memref<128x256xbf16, #tpu.memory_space<vmem>>, vector<128x256xbf16>
    %cst_7 = arith.constant dense<0.000000e+00> : vector<128x256xf32>
    %8 = tpu.matmul %6, %7, %cst_7 {dimension_numbers = #tpu.dot_dimension_numbers<[1], [0], [0], [1], [0, 0, 1, 1], [], []>} : vector<128x128xbf16>, vector<128x256xbf16>, vector<128x256xf32> -> vector<128x256xf32>
    %9 = vector.extract_strided_slice %8 {offsets = [0, 0], sizes = [128, 128], strides = [1, 1]} : vector<128x256xf32> to vector<128x128xf32>
    %10 = arith.truncf %9 : vector<128x128xf32> to vector<128x128xbf16>
    %c0_8 = arith.constant 0 : index
    %c0_9 = arith.constant 0 : index
    %11 = vector.load %arg5[%c0_8, %c0_9] : memref<128x128xbf16, #tpu.memory_space<vmem>>, vector<128x128xbf16>
    tpu.vector_store %arg5[%c0_8, %c0_9], %10 {strides = array<i32>} : memref<128x128xbf16, #tpu.memory_space<vmem>>, vector<128x128xbf16>,
    %12 = vector.extract_strided_slice %8 {offsets = [0, 128], sizes = [128, 128], strides = [1, 1]} : vector<128x256xf32> to vector<128x128xf32>
    %c0_10 = arith.constant 0 : index
    %c0_11 = arith.constant 0 : index
    %13 = vector.load %arg6[%c0_10, %c0_11] : memref<128x128xf32, #tpu.memory_space<vmem>>, vector<128x128xf32>
    tpu.vector_store %arg6[%c0_10, %c0_11], %12 {strides = array<i32>} : memref<128x128xf32, #tpu.memory_space<vmem>>, vector<128x128xf32>,
    return
  }
  func.func @transform_0(%arg0: i32) -> (i32, i32) {
    %c0_i32 = arith.constant 0 : i32
    %c0_i32_0 = arith.constant 0 : i32
    return %arg0, %c0_i32 : i32, i32
  }
  func.func @transform_1(%arg0: i32) -> (i32, i32) {
    %c0_i32 = arith.constant 0 : i32
    %c0_i32_0 = arith.constant 0 : i32
    %c0_i32_1 = arith.constant 0 : i32
    return %c0_i32, %c0_i32_0 : i32, i32
  }
  func.func @transform_2(%arg0: i32) -> (i32, i32) {
    %c0_i32 = arith.constant 0 : i32
    %c0_i32_0 = arith.constant 0 : i32
    %c0_i32_1 = arith.constant 0 : i32
    return %c0_i32, %c0_i32_0 : i32, i32
  }
  func.func @transform_3(%arg0: i32) -> (i32, i32) {
    %c0_i32 = arith.constant 0 : i32
    %c0_i32_0 = arith.constant 0 : i32
    %c0_i32_1 = arith.constant 0 : i32
    return %c0_i32, %c0_i32_0 : i32, i32
  }
  func.func @transform_4(%arg0: i32) -> (i32, i32) {
    %c0_i32 = arith.constant 0 : i32
    %c0_i32_0 = arith.constant 0 : i32
    return %arg0, %c0_i32 : i32, i32
  }
  func.func @transform_5(%arg0: i32) -> (i32, i32) {
    %c0_i32 = arith.constant 0 : i32
    %c0_i32_0 = arith.constant 0 : i32
    return %arg0, %c0_i32 : i32, i32
  }
}

module attributes {stable_mosaic.version = 11 : i64} {
  func.func @_agg_kernel(%arg0: i32, %arg1: i32, %arg2: memref<128x128xbf16, #tpu.memory_space<vmem>>, %arg3: memref<128x128xbf16, #tpu.memory_space<vmem>>, %arg4: memref<128x128xf32, #tpu.memory_space<vmem>>, %arg5: memref<128x1xf32, #tpu.memory_space<vmem>>, %arg6: memref<1x128xf32, #tpu.memory_space<vmem>>, %arg7: memref<128x128xf32, #tpu.memory_space<vmem>>, %arg8: memref<128x128xf32, #tpu.memory_space<vmem>>) attributes {dimension_semantics = [#tpu.dimension_semantics<parallel>, #tpu.dimension_semantics<arbitrary>], iteration_bounds = array<i64: 1, 1>, scalar_prefetch = 0 : i64, scratch_operands = 1 : i64, tpu.core_type = #tpu.core_type<tc>, window_params = [{transform_indices = @transform_0, window_bounds = array<i64: 128, 128>}, {transform_indices = @transform_1, window_bounds = array<i64: 128, 128>}, {transform_indices = @transform_2, window_bounds = array<i64: 128, 128>}, {transform_indices = @transform_3, window_bounds = array<i64: 128, 1>}, {pipeline_mode = #tpu.pipeline_mode<synchronous>, transform_indices = @transform_4, window_bounds = array<i64: 1, 128>}, {transform_indices = @transform_5, window_bounds = array<i64: 128, 128>}]} {
    %c0_i32 = arith.constant 0 : i32
    %0 = arith.cmpi eq, %arg1, %c0_i32 : i32
    %1 = arith.extui %0 : i1 to i32
    %c0_i32_0 = arith.constant 0 : i32
    %2 = arith.cmpi ne, %1, %c0_i32_0 : i32
    scf.if %2 {
      %cst_10 = arith.constant 0.000000e+00 : f32
      %12 = vector.broadcast %cst_10 : f32 to vector<128x128xf32>
      %c0_11 = arith.constant 0 : index
      %c0_12 = arith.constant 0 : index
      %13 = vector.load %arg8[%c0_11, %c0_12] : memref<128x128xf32, #tpu.memory_space<vmem>>, vector<128x128xf32>
      tpu.vector_store %arg8[%c0_11, %c0_12], %12 {strides = array<i32>} : memref<128x128xf32, #tpu.memory_space<vmem>>, vector<128x128xf32>,
    } else {
    }
    %c0 = arith.constant 0 : index
    %c0_1 = arith.constant 0 : index
    %3 = vector.load %arg8[%c0, %c0_1] : memref<128x128xf32, #tpu.memory_space<vmem>>, vector<128x128xf32>
    %c0_2 = arith.constant 0 : index
    %c0_3 = arith.constant 0 : index
    %4 = vector.load %arg2[%c0_2, %c0_3] : memref<128x128xbf16, #tpu.memory_space<vmem>>, vector<128x128xbf16>
    %c0_4 = arith.constant 0 : index
    %c0_5 = arith.constant 0 : index
    %5 = vector.load %arg3[%c0_4, %c0_5] : memref<128x128xbf16, #tpu.memory_space<vmem>>, vector<128x128xbf16>
    %cst = arith.constant dense<0.000000e+00> : vector<128x128xf32>
    %6 = tpu.matmul %4, %5, %cst {dimension_numbers = #tpu.dot_dimension_numbers<[1], [0], [0], [1], [0, 0, 1, 1], [], []>} : vector<128x128xbf16>, vector<128x128xbf16>, vector<128x128xf32> -> vector<128x128xf32>
    %7 = arith.addf %3, %6 : vector<128x128xf32>
    %c0_6 = arith.constant 0 : index
    %c0_7 = arith.constant 0 : index
    %8 = vector.load %arg8[%c0_6, %c0_7] : memref<128x128xf32, #tpu.memory_space<vmem>>, vector<128x128xf32>
    tpu.vector_store %arg8[%c0_6, %c0_7], %7 {strides = array<i32>} : memref<128x128xf32, #tpu.memory_space<vmem>>, vector<128x128xf32>,
    %c0_i32_8 = arith.constant 0 : i32
    %9 = arith.cmpi eq, %arg1, %c0_i32_8 : i32
    %10 = arith.extui %9 : i1 to i32
    %c0_i32_9 = arith.constant 0 : i32
    %11 = arith.cmpi ne, %10, %c0_i32_9 : i32
    scf.if %11 {
      %c0_10 = arith.constant 0 : index
      %c0_11 = arith.constant 0 : index
      %12 = vector.load %arg8[%c0_10, %c0_11] : memref<128x128xf32, #tpu.memory_space<vmem>>, vector<128x128xf32>
      %c0_12 = arith.constant 0 : index
      %c0_13 = arith.constant 0 : index
      %13 = vector.load %arg5[%c0_12, %c0_13] : memref<128x1xf32, #tpu.memory_space<vmem>>, vector<128x1xf32>
      %14 = vector.broadcast %13 : vector<128x1xf32> to vector<128x128xf32>
      %15 = arith.mulf %12, %14 : vector<128x128xf32>
      %c0_14 = arith.constant 0 : index
      %c0_15 = arith.constant 0 : index
      %16 = vector.load %arg4[%c0_14, %c0_15] : memref<128x128xf32, #tpu.memory_space<vmem>>, vector<128x128xf32>
      %17 = arith.addf %15, %16 : vector<128x128xf32>
      %c0_16 = arith.constant 0 : index
      %c0_17 = arith.constant 0 : index
      %18 = vector.load %arg6[%c0_16, %c0_17] : memref<1x128xf32, #tpu.memory_space<vmem>>, vector<1x128xf32>
      %19 = vector.broadcast %18 : vector<1x128xf32> to vector<128x128xf32>
      %20 = arith.addf %17, %19 : vector<128x128xf32>
      %c0_18 = arith.constant 0 : index
      %c0_19 = arith.constant 0 : index
      %21 = vector.load %arg7[%c0_18, %c0_19] : memref<128x128xf32, #tpu.memory_space<vmem>>, vector<128x128xf32>
      tpu.vector_store %arg7[%c0_18, %c0_19], %20 {strides = array<i32>} : memref<128x128xf32, #tpu.memory_space<vmem>>, vector<128x128xf32>,
    } else {
    }
    return
  }
  func.func @transform_0(%arg0: i32, %arg1: i32) -> (i32, i32) {
    %c0_i32 = arith.constant 0 : i32
    return %arg0, %arg1 : i32, i32
  }
  func.func @transform_1(%arg0: i32, %arg1: i32) -> (i32, i32) {
    %c0_i32 = arith.constant 0 : i32
    %c0_i32_0 = arith.constant 0 : i32
    return %arg1, %c0_i32 : i32, i32
  }
  func.func @transform_2(%arg0: i32, %arg1: i32) -> (i32, i32) {
    %c0_i32 = arith.constant 0 : i32
    %c0_i32_0 = arith.constant 0 : i32
    return %arg0, %c0_i32 : i32, i32
  }
  func.func @transform_3(%arg0: i32, %arg1: i32) -> (i32, i32) {
    %c0_i32 = arith.constant 0 : i32
    %c0_i32_0 = arith.constant 0 : i32
    return %arg0, %c0_i32 : i32, i32
  }
  func.func @transform_4(%arg0: i32, %arg1: i32) -> (i32, i32) {
    %c0_i32 = arith.constant 0 : i32
    %c0_i32_0 = arith.constant 0 : i32
    %c0_i32_1 = arith.constant 0 : i32
    return %c0_i32, %c0_i32_0 : i32, i32
  }
  func.func @transform_5(%arg0: i32, %arg1: i32) -> (i32, i32) {
    %c0_i32 = arith.constant 0 : i32
    %c0_i32_0 = arith.constant 0 : i32
    return %arg0, %c0_i32 : i32, i32
  }
}

module attributes {stable_mosaic.version = 11 : i64} {
  func.func @_bn_stats_kernel(%arg0: i32, %arg1: memref<1x128xf32, #tpu.memory_space<vmem>>, %arg2: memref<128x128xf32, #tpu.memory_space<vmem>>, %arg3: memref<1x256xf32, #tpu.memory_space<vmem>>, %arg4: memref<1x256xf32, #tpu.memory_space<vmem>>) attributes {dimension_semantics = [#tpu.dimension_semantics<arbitrary>], iteration_bounds = array<i64: 1>, scalar_prefetch = 0 : i64, scratch_operands = 1 : i64, tpu.core_type = #tpu.core_type<tc>, window_params = [{transform_indices = @transform_0, window_bounds = array<i64: 1, 128>}, {transform_indices = @transform_1, window_bounds = array<i64: 128, 128>}, {pipeline_mode = #tpu.pipeline_mode<synchronous>, transform_indices = @transform_2, window_bounds = array<i64: 1, 256>}]} {
    %c0_i32 = arith.constant 0 : i32
    %0 = arith.cmpi eq, %arg0, %c0_i32 : i32
    %1 = arith.extui %0 : i1 to i32
    %c0_i32_0 = arith.constant 0 : i32
    %2 = arith.cmpi ne, %1, %c0_i32_0 : i32
    scf.if %2 {
      %cst_10 = arith.constant 0.000000e+00 : f32
      %14 = vector.broadcast %cst_10 : f32 to vector<1x256xf32>
      %c0_11 = arith.constant 0 : index
      %c0_12 = arith.constant 0 : index
      %15 = vector.load %arg4[%c0_11, %c0_12] : memref<1x256xf32, #tpu.memory_space<vmem>>, vector<1x256xf32>
      tpu.vector_store %arg4[%c0_11, %c0_12], %14 {strides = array<i32>} : memref<1x256xf32, #tpu.memory_space<vmem>>, vector<1x256xf32>,
    } else {
    }
    %c0 = arith.constant 0 : index
    %c0_1 = arith.constant 0 : index
    %3 = vector.load %arg2[%c0, %c0_1] : memref<128x128xf32, #tpu.memory_space<vmem>>, vector<128x128xf32>
    %c0_2 = arith.constant 0 : index
    %c0_3 = arith.constant 0 : index
    %4 = vector.load %arg4[%c0_2, %c0_3] : memref<1x256xf32, #tpu.memory_space<vmem>>, vector<1x256xf32>
    %c0_4 = arith.constant 0 : index
    %c0_5 = arith.constant 0 : index
    %5 = vector.load %arg1[%c0_4, %c0_5] : memref<1x128xf32, #tpu.memory_space<vmem>>, vector<1x128xf32>
    %6 = arith.mulf %3, %3 : vector<128x128xf32>
    %7 = tpu.concatenate %3, %6 in 1 : vector<128x128xf32>, vector<128x128xf32> -> vector<128x256xf32>
    %cst = arith.constant dense<0.000000e+00> : vector<1x256xf32>
    %8 = tpu.matmul %5, %7, %cst {dimension_numbers = #tpu.dot_dimension_numbers<[1], [0], [0], [1], [0, 0, 1, 1], [], []>} : vector<1x128xf32>, vector<128x256xf32>, vector<1x256xf32> -> vector<1x256xf32>
    %9 = arith.addf %4, %8 : vector<1x256xf32>
    %c0_6 = arith.constant 0 : index
    %c0_7 = arith.constant 0 : index
    %10 = vector.load %arg4[%c0_6, %c0_7] : memref<1x256xf32, #tpu.memory_space<vmem>>, vector<1x256xf32>
    tpu.vector_store %arg4[%c0_6, %c0_7], %9 {strides = array<i32>} : memref<1x256xf32, #tpu.memory_space<vmem>>, vector<1x256xf32>,
    %c0_i32_8 = arith.constant 0 : i32
    %11 = arith.cmpi eq, %arg0, %c0_i32_8 : i32
    %12 = arith.extui %11 : i1 to i32
    %c0_i32_9 = arith.constant 0 : i32
    %13 = arith.cmpi ne, %12, %c0_i32_9 : i32
    scf.if %13 {
      %c0_10 = arith.constant 0 : index
      %c0_11 = arith.constant 0 : index
      %14 = vector.load %arg4[%c0_10, %c0_11] : memref<1x256xf32, #tpu.memory_space<vmem>>, vector<1x256xf32>
      %c0_12 = arith.constant 0 : index
      %c0_13 = arith.constant 0 : index
      %15 = vector.load %arg3[%c0_12, %c0_13] : memref<1x256xf32, #tpu.memory_space<vmem>>, vector<1x256xf32>
      tpu.vector_store %arg3[%c0_12, %c0_13], %14 {strides = array<i32>} : memref<1x256xf32, #tpu.memory_space<vmem>>, vector<1x256xf32>,
    } else {
    }
    return
  }
  func.func @transform_0(%arg0: i32) -> (i32, i32) {
    %c0_i32 = arith.constant 0 : i32
    %c0_i32_0 = arith.constant 0 : i32
    return %c0_i32, %arg0 : i32, i32
  }
  func.func @transform_1(%arg0: i32) -> (i32, i32) {
    %c0_i32 = arith.constant 0 : i32
    %c0_i32_0 = arith.constant 0 : i32
    return %arg0, %c0_i32 : i32, i32
  }
  func.func @transform_2(%arg0: i32) -> (i32, i32) {
    %c0_i32 = arith.constant 0 : i32
    %c0_i32_0 = arith.constant 0 : i32
    %c0_i32_1 = arith.constant 0 : i32
    return %c0_i32, %c0_i32_0 : i32, i32
  }
}

module attributes {stable_mosaic.version = 11 : i64} {
  func.func @_bn_transform_kernel(%arg0: i32, %arg1: memref<128x128xf32, #tpu.memory_space<vmem>>, %arg2: memref<1x256xf32, #tpu.memory_space<vmem>>, %arg3: memref<1x128xf32, #tpu.memory_space<vmem>>, %arg4: memref<1x128xf32, #tpu.memory_space<vmem>>, %arg5: memref<128x256xbf16, #tpu.memory_space<vmem>>, %arg6: memref<128x128xbf16, #tpu.memory_space<vmem>>, %arg7: memref<128x128xf32, #tpu.memory_space<vmem>>) attributes {dimension_semantics = [#tpu.dimension_semantics<parallel>], iteration_bounds = array<i64: 1>, scalar_prefetch = 0 : i64, scratch_operands = 0 : i64, tpu.core_type = #tpu.core_type<tc>, window_params = [{transform_indices = @transform_0, window_bounds = array<i64: 128, 128>}, {pipeline_mode = #tpu.pipeline_mode<synchronous>, transform_indices = @transform_1, window_bounds = array<i64: 1, 256>}, {pipeline_mode = #tpu.pipeline_mode<synchronous>, transform_indices = @transform_2, window_bounds = array<i64: 1, 128>}, {pipeline_mode = #tpu.pipeline_mode<synchronous>, transform_indices = @transform_3, window_bounds = array<i64: 1, 128>}, {pipeline_mode = #tpu.pipeline_mode<synchronous>, transform_indices = @transform_4, window_bounds = array<i64: 128, 256>}, {transform_indices = @transform_5, window_bounds = array<i64: 128, 128>}, {transform_indices = @transform_6, window_bounds = array<i64: 128, 128>}]} {
    %c0 = arith.constant 0 : index
    %c0_0 = arith.constant 0 : index
    %0 = vector.load %arg2[%c0, %c0_0] : memref<1x256xf32, #tpu.memory_space<vmem>>, vector<1x256xf32>
    %1 = vector.extract_strided_slice %0 {offsets = [0, 0], sizes = [1, 128], strides = [1, 1]} : vector<1x256xf32> to vector<1x128xf32>
    %2 = vector.extract_strided_slice %0 {offsets = [0, 128], sizes = [1, 128], strides = [1, 1]} : vector<1x256xf32> to vector<1x128xf32>
    %3 = arith.mulf %1, %1 : vector<1x128xf32>
    %4 = arith.subf %2, %3 : vector<1x128xf32>
    %cst = arith.constant 0.000000e+00 : f32
    %5 = vector.broadcast %cst : f32 to vector<1x128xf32>
    %6 = arith.maximumf %4, %5 : vector<1x128xf32>
    %c0_1 = arith.constant 0 : index
    %c0_2 = arith.constant 0 : index
    %7 = vector.load %arg3[%c0_1, %c0_2] : memref<1x128xf32, #tpu.memory_space<vmem>>, vector<1x128xf32>
    %cst_3 = arith.constant 9.99999974E-6 : f32
    %8 = vector.broadcast %cst_3 : f32 to vector<1x128xf32>
    %9 = arith.addf %6, %8 : vector<1x128xf32>
    %10 = math.rsqrt %9 : vector<1x128xf32>
    %11 = arith.mulf %7, %10 : vector<1x128xf32>
    %c0_4 = arith.constant 0 : index
    %c0_5 = arith.constant 0 : index
    %12 = vector.load %arg4[%c0_4, %c0_5] : memref<1x128xf32, #tpu.memory_space<vmem>>, vector<1x128xf32>
    %13 = arith.mulf %1, %11 : vector<1x128xf32>
    %14 = arith.subf %12, %13 : vector<1x128xf32>
    %c0_6 = arith.constant 0 : index
    %c0_7 = arith.constant 0 : index
    %15 = vector.load %arg1[%c0_6, %c0_7] : memref<128x128xf32, #tpu.memory_space<vmem>>, vector<128x128xf32>
    %16 = vector.broadcast %11 : vector<1x128xf32> to vector<128x128xf32>
    %17 = arith.mulf %15, %16 : vector<128x128xf32>
    %18 = vector.broadcast %14 : vector<1x128xf32> to vector<128x128xf32>
    %19 = arith.addf %17, %18 : vector<128x128xf32>
    %cst_8 = arith.constant 0.000000e+00 : f32
    %20 = vector.broadcast %cst_8 : f32 to vector<128x128xf32>
    %21 = arith.maximumf %19, %20 : vector<128x128xf32>
    %22 = arith.truncf %21 : vector<128x128xf32> to vector<128x128xbf16>
    %c0_9 = arith.constant 0 : index
    %c0_10 = arith.constant 0 : index
    %23 = vector.load %arg5[%c0_9, %c0_10] : memref<128x256xbf16, #tpu.memory_space<vmem>>, vector<128x256xbf16>
    %cst_11 = arith.constant dense<0.000000e+00> : vector<128x256xf32>
    %24 = tpu.matmul %22, %23, %cst_11 {dimension_numbers = #tpu.dot_dimension_numbers<[1], [0], [0], [1], [0, 0, 1, 1], [], []>} : vector<128x128xbf16>, vector<128x256xbf16>, vector<128x256xf32> -> vector<128x256xf32>
    %25 = vector.extract_strided_slice %24 {offsets = [0, 0], sizes = [128, 128], strides = [1, 1]} : vector<128x256xf32> to vector<128x128xf32>
    %26 = arith.truncf %25 : vector<128x128xf32> to vector<128x128xbf16>
    %c0_12 = arith.constant 0 : index
    %c0_13 = arith.constant 0 : index
    %27 = vector.load %arg6[%c0_12, %c0_13] : memref<128x128xbf16, #tpu.memory_space<vmem>>, vector<128x128xbf16>
    tpu.vector_store %arg6[%c0_12, %c0_13], %26 {strides = array<i32>} : memref<128x128xbf16, #tpu.memory_space<vmem>>, vector<128x128xbf16>,
    %28 = vector.extract_strided_slice %24 {offsets = [0, 128], sizes = [128, 128], strides = [1, 1]} : vector<128x256xf32> to vector<128x128xf32>
    %c0_14 = arith.constant 0 : index
    %c0_15 = arith.constant 0 : index
    %29 = vector.load %arg7[%c0_14, %c0_15] : memref<128x128xf32, #tpu.memory_space<vmem>>, vector<128x128xf32>
    tpu.vector_store %arg7[%c0_14, %c0_15], %28 {strides = array<i32>} : memref<128x128xf32, #tpu.memory_space<vmem>>, vector<128x128xf32>,
    return
  }
  func.func @transform_0(%arg0: i32) -> (i32, i32) {
    %c0_i32 = arith.constant 0 : i32
    %c0_i32_0 = arith.constant 0 : i32
    return %arg0, %c0_i32 : i32, i32
  }
  func.func @transform_1(%arg0: i32) -> (i32, i32) {
    %c0_i32 = arith.constant 0 : i32
    %c0_i32_0 = arith.constant 0 : i32
    %c0_i32_1 = arith.constant 0 : i32
    return %c0_i32, %c0_i32_0 : i32, i32
  }
  func.func @transform_2(%arg0: i32) -> (i32, i32) {
    %c0_i32 = arith.constant 0 : i32
    %c0_i32_0 = arith.constant 0 : i32
    %c0_i32_1 = arith.constant 0 : i32
    return %c0_i32, %c0_i32_0 : i32, i32
  }
  func.func @transform_3(%arg0: i32) -> (i32, i32) {
    %c0_i32 = arith.constant 0 : i32
    %c0_i32_0 = arith.constant 0 : i32
    %c0_i32_1 = arith.constant 0 : i32
    return %c0_i32, %c0_i32_0 : i32, i32
  }
  func.func @transform_4(%arg0: i32) -> (i32, i32) {
    %c0_i32 = arith.constant 0 : i32
    %c0_i32_0 = arith.constant 0 : i32
    %c0_i32_1 = arith.constant 0 : i32
    return %c0_i32, %c0_i32_0 : i32, i32
  }
  func.func @transform_5(%arg0: i32) -> (i32, i32) {
    %c0_i32 = arith.constant 0 : i32
    %c0_i32_0 = arith.constant 0 : i32
    return %arg0, %c0_i32 : i32, i32
  }
  func.func @transform_6(%arg0: i32) -> (i32, i32) {
    %c0_i32 = arith.constant 0 : i32
    %c0_i32_0 = arith.constant 0 : i32
    return %arg0, %c0_i32 : i32, i32
  }
}

module attributes {stable_mosaic.version = 11 : i64} {
  func.func @_pool_kernel(%arg0: i32, %arg1: memref<128x128xf32, #tpu.memory_space<vmem>>, %arg2: memref<1x256xf32, #tpu.memory_space<vmem>>, %arg3: memref<1x128xf32, #tpu.memory_space<vmem>>, %arg4: memref<1x128xf32, #tpu.memory_space<vmem>>, %arg5: memref<2x128xbf16, #tpu.memory_space<vmem>>, %arg6: memref<2x1xf32, #tpu.memory_space<vmem>>, %arg7: memref<128x2xf32, #tpu.memory_space<vmem>>, %arg8: memref<2x256xf32, #tpu.memory_space<vmem>>, %arg9: memref<2x128xf32, #tpu.memory_space<vmem>>, %arg10: memref<2x128xf32, #tpu.memory_space<vmem>>) attributes {dimension_semantics = [#tpu.dimension_semantics<arbitrary>], iteration_bounds = array<i64: 1>, scalar_prefetch = 0 : i64, scratch_operands = 2 : i64, tpu.core_type = #tpu.core_type<tc>, window_params = [{transform_indices = @transform_0, window_bounds = array<i64: 128, 128>}, {pipeline_mode = #tpu.pipeline_mode<synchronous>, transform_indices = @transform_1, window_bounds = array<i64: 1, 256>}, {pipeline_mode = #tpu.pipeline_mode<synchronous>, transform_indices = @transform_2, window_bounds = array<i64: 1, 128>}, {pipeline_mode = #tpu.pipeline_mode<synchronous>, transform_indices = @transform_3, window_bounds = array<i64: 1, 128>}, {transform_indices = @transform_4, window_bounds = array<i64: 2, 128>}, {pipeline_mode = #tpu.pipeline_mode<synchronous>, transform_indices = @transform_5, window_bounds = array<i64: 2, 1>}, {transform_indices = @transform_6, window_bounds = array<i64: 128, 2>}, {pipeline_mode = #tpu.pipeline_mode<synchronous>, transform_indices = @transform_7, window_bounds = array<i64: 2, 256>}]} {
    %c0_i32 = arith.constant 0 : i32
    %0 = arith.cmpi eq, %arg0, %c0_i32 : i32
    %1 = arith.extui %0 : i1 to i32
    %c0_i32_0 = arith.constant 0 : i32
    %2 = arith.cmpi ne, %1, %c0_i32_0 : i32
    scf.if %2 {
      %cst_27 = arith.constant 0.000000e+00 : f32
      %49 = vector.broadcast %cst_27 : f32 to vector<2x128xf32>
      %c0_28 = arith.constant 0 : index
      %c0_29 = arith.constant 0 : index
      %50 = vector.load %arg9[%c0_28, %c0_29] : memref<2x128xf32, #tpu.memory_space<vmem>>, vector<2x128xf32>
      tpu.vector_store %arg9[%c0_28, %c0_29], %49 {strides = array<i32>} : memref<2x128xf32, #tpu.memory_space<vmem>>, vector<2x128xf32>,
      %cst_30 = arith.constant 0.000000e+00 : f32
      %51 = vector.broadcast %cst_30 : f32 to vector<2x128xf32>
      %c0_31 = arith.constant 0 : index
      %c0_32 = arith.constant 0 : index
      %52 = vector.load %arg10[%c0_31, %c0_32] : memref<2x128xf32, #tpu.memory_space<vmem>>, vector<2x128xf32>
      tpu.vector_store %arg10[%c0_31, %c0_32], %51 {strides = array<i32>} : memref<2x128xf32, #tpu.memory_space<vmem>>, vector<2x128xf32>,
    } else {
    }
    %c0 = arith.constant 0 : index
    %c0_1 = arith.constant 0 : index
    %3 = vector.load %arg2[%c0, %c0_1] : memref<1x256xf32, #tpu.memory_space<vmem>>, vector<1x256xf32>
    %4 = vector.extract_strided_slice %3 {offsets = [0, 0], sizes = [1, 128], strides = [1, 1]} : vector<1x256xf32> to vector<1x128xf32>
    %5 = vector.extract_strided_slice %3 {offsets = [0, 128], sizes = [1, 128], strides = [1, 1]} : vector<1x256xf32> to vector<1x128xf32>
    %6 = arith.mulf %4, %4 : vector<1x128xf32>
    %7 = arith.subf %5, %6 : vector<1x128xf32>
    %cst = arith.constant 0.000000e+00 : f32
    %8 = vector.broadcast %cst : f32 to vector<1x128xf32>
    %9 = arith.maximumf %7, %8 : vector<1x128xf32>
    %c0_2 = arith.constant 0 : index
    %c0_3 = arith.constant 0 : index
    %10 = vector.load %arg3[%c0_2, %c0_3] : memref<1x128xf32, #tpu.memory_space<vmem>>, vector<1x128xf32>
    %cst_4 = arith.constant 9.99999974E-6 : f32
    %11 = vector.broadcast %cst_4 : f32 to vector<1x128xf32>
    %12 = arith.addf %9, %11 : vector<1x128xf32>
    %13 = math.rsqrt %12 : vector<1x128xf32>
    %14 = arith.mulf %10, %13 : vector<1x128xf32>
    %c0_5 = arith.constant 0 : index
    %c0_6 = arith.constant 0 : index
    %15 = vector.load %arg4[%c0_5, %c0_6] : memref<1x128xf32, #tpu.memory_space<vmem>>, vector<1x128xf32>
    %16 = arith.mulf %4, %14 : vector<1x128xf32>
    %17 = arith.subf %15, %16 : vector<1x128xf32>
    %c0_7 = arith.constant 0 : index
    %c0_8 = arith.constant 0 : index
    %18 = vector.load %arg1[%c0_7, %c0_8] : memref<128x128xf32, #tpu.memory_space<vmem>>, vector<128x128xf32>
    %19 = vector.broadcast %14 : vector<1x128xf32> to vector<128x128xf32>
    %20 = arith.mulf %18, %19 : vector<128x128xf32>
    %21 = vector.broadcast %17 : vector<1x128xf32> to vector<128x128xf32>
    %22 = arith.addf %20, %21 : vector<128x128xf32>
    %cst_9 = arith.constant 0.000000e+00 : f32
    %23 = vector.broadcast %cst_9 : f32 to vector<128x128xf32>
    %24 = arith.maximumf %22, %23 : vector<128x128xf32>
    %c0_10 = arith.constant 0 : index
    %c0_11 = arith.constant 0 : index
    %25 = vector.load %arg9[%c0_10, %c0_11] : memref<2x128xf32, #tpu.memory_space<vmem>>, vector<2x128xf32>
    %c0_12 = arith.constant 0 : index
    %c0_13 = arith.constant 0 : index
    %26 = vector.load %arg5[%c0_12, %c0_13] : memref<2x128xbf16, #tpu.memory_space<vmem>>, vector<2x128xbf16>
    %27 = arith.truncf %24 : vector<128x128xf32> to vector<128x128xbf16>
    %cst_14 = arith.constant dense<0.000000e+00> : vector<2x128xf32>
    %28 = tpu.matmul %26, %27, %cst_14 {dimension_numbers = #tpu.dot_dimension_numbers<[1], [0], [0], [1], [0, 0, 1, 1], [], []>} : vector<2x128xbf16>, vector<128x128xbf16>, vector<2x128xf32> -> vector<2x128xf32>
    %29 = arith.addf %25, %28 : vector<2x128xf32>
    %c0_15 = arith.constant 0 : index
    %c0_16 = arith.constant 0 : index
    %30 = vector.load %arg9[%c0_15, %c0_16] : memref<2x128xf32, #tpu.memory_space<vmem>>, vector<2x128xf32>
    tpu.vector_store %arg9[%c0_15, %c0_16], %29 {strides = array<i32>} : memref<2x128xf32, #tpu.memory_space<vmem>>, vector<2x128xf32>,
    %c0_17 = arith.constant 0 : index
    %c0_18 = arith.constant 0 : index
    %31 = vector.load %arg7[%c0_17, %c0_18] : memref<128x2xf32, #tpu.memory_space<vmem>>, vector<128x2xf32>
    %32 = vector.extract_strided_slice %31 {offsets = [0, 0], sizes = [128, 1], strides = [1, 1]} : vector<128x2xf32> to vector<128x1xf32>
    %33 = vector.broadcast %32 : vector<128x1xf32> to vector<128x128xf32>
    %34 = arith.mulf %24, %33 : vector<128x128xf32>
    %cst_19 = arith.constant dense<0xFF800000> : vector<128xf32>
    %35 = vector.multi_reduction <maximumf>, %34, %cst_19 [0] : vector<128x128xf32> to vector<128xf32>
    %36 = vector.shape_cast %35 : vector<128xf32> to vector<1x128xf32>
    %37 = vector.extract_strided_slice %31 {offsets = [0, 1], sizes = [128, 1], strides = [1, 1]} : vector<128x2xf32> to vector<128x1xf32>
    %38 = vector.broadcast %37 : vector<128x1xf32> to vector<128x128xf32>
    %39 = arith.mulf %24, %38 : vector<128x128xf32>
    %cst_20 = arith.constant dense<0xFF800000> : vector<128xf32>
    %40 = vector.multi_reduction <maximumf>, %39, %cst_20 [0] : vector<128x128xf32> to vector<128xf32>
    %41 = vector.shape_cast %40 : vector<128xf32> to vector<1x128xf32>
    %42 = tpu.concatenate %36, %41 in 0 : vector<1x128xf32>, vector<1x128xf32> -> vector<2x128xf32>
    %c0_21 = arith.constant 0 : index
    %c0_22 = arith.constant 0 : index
    %43 = vector.load %arg10[%c0_21, %c0_22] : memref<2x128xf32, #tpu.memory_space<vmem>>, vector<2x128xf32>
    %44 = arith.maximumf %43, %42 : vector<2x128xf32>
    %c0_23 = arith.constant 0 : index
    %c0_24 = arith.constant 0 : index
    %45 = vector.load %arg10[%c0_23, %c0_24] : memref<2x128xf32, #tpu.memory_space<vmem>>, vector<2x128xf32>
    tpu.vector_store %arg10[%c0_23, %c0_24], %44 {strides = array<i32>} : memref<2x128xf32, #tpu.memory_space<vmem>>, vector<2x128xf32>,
    %c0_i32_25 = arith.constant 0 : i32
    %46 = arith.cmpi eq, %arg0, %c0_i32_25 : i32
    %47 = arith.extui %46 : i1 to i32
    %c0_i32_26 = arith.constant 0 : i32
    %48 = arith.cmpi ne, %47, %c0_i32_26 : i32
    scf.if %48 {
      %c0_27 = arith.constant 0 : index
      %c0_28 = arith.constant 0 : index
      %49 = vector.load %arg9[%c0_27, %c0_28] : memref<2x128xf32, #tpu.memory_space<vmem>>, vector<2x128xf32>
      %c0_29 = arith.constant 0 : index
      %c0_30 = arith.constant 0 : index
      %50 = vector.load %arg6[%c0_29, %c0_30] : memref<2x1xf32, #tpu.memory_space<vmem>>, vector<2x1xf32>
      %51 = vector.broadcast %50 : vector<2x1xf32> to vector<2x128xf32>
      %52 = arith.mulf %49, %51 : vector<2x128xf32>
      %c0_31 = arith.constant 0 : index
      %c0_32 = arith.constant 0 : index
      %53 = vector.load %arg10[%c0_31, %c0_32] : memref<2x128xf32, #tpu.memory_space<vmem>>, vector<2x128xf32>
      %54 = tpu.concatenate %52, %53 in 1 : vector<2x128xf32>, vector<2x128xf32> -> vector<2x256xf32>
      %c0_33 = arith.constant 0 : index
      %c0_34 = arith.constant 0 : index
      %55 = vector.load %arg8[%c0_33, %c0_34] : memref<2x256xf32, #tpu.memory_space<vmem>>, vector<2x256xf32>
      tpu.vector_store %arg8[%c0_33, %c0_34], %54 {strides = array<i32>} : memref<2x256xf32, #tpu.memory_space<vmem>>, vector<2x256xf32>,
    } else {
    }
    return
  }
  func.func @transform_0(%arg0: i32) -> (i32, i32) {
    %c0_i32 = arith.constant 0 : i32
    %c0_i32_0 = arith.constant 0 : i32
    return %arg0, %c0_i32 : i32, i32
  }
  func.func @transform_1(%arg0: i32) -> (i32, i32) {
    %c0_i32 = arith.constant 0 : i32
    %c0_i32_0 = arith.constant 0 : i32
    %c0_i32_1 = arith.constant 0 : i32
    return %c0_i32, %c0_i32_0 : i32, i32
  }
  func.func @transform_2(%arg0: i32) -> (i32, i32) {
    %c0_i32 = arith.constant 0 : i32
    %c0_i32_0 = arith.constant 0 : i32
    %c0_i32_1 = arith.constant 0 : i32
    return %c0_i32, %c0_i32_0 : i32, i32
  }
  func.func @transform_3(%arg0: i32) -> (i32, i32) {
    %c0_i32 = arith.constant 0 : i32
    %c0_i32_0 = arith.constant 0 : i32
    %c0_i32_1 = arith.constant 0 : i32
    return %c0_i32, %c0_i32_0 : i32, i32
  }
  func.func @transform_4(%arg0: i32) -> (i32, i32) {
    %c0_i32 = arith.constant 0 : i32
    %c0_i32_0 = arith.constant 0 : i32
    return %c0_i32, %arg0 : i32, i32
  }
  func.func @transform_5(%arg0: i32) -> (i32, i32) {
    %c0_i32 = arith.constant 0 : i32
    %c0_i32_0 = arith.constant 0 : i32
    %c0_i32_1 = arith.constant 0 : i32
    return %c0_i32, %c0_i32_0 : i32, i32
  }
  func.func @transform_6(%arg0: i32) -> (i32, i32) {
    %c0_i32 = arith.constant 0 : i32
    %c0_i32_0 = arith.constant 0 : i32
    return %arg0, %c0_i32 : i32, i32
  }
  func.func @transform_7(%arg0: i32) -> (i32, i32) {
    %c0_i32 = arith.constant 0 : i32
    %c0_i32_0 = arith.constant 0 : i32
    %c0_i32_1 = arith.constant 0 : i32
    return %c0_i32, %c0_i32_0 : i32, i32
  }
}

</mosaic_0001>

<bundles_post_ra>
// kernel: gnn_forward.13
= control target key start
LH: loop header
LB: loop body
LE: loop exit
PB: predicated region body
PF: predicated region fallthrough
CT: control target
= control target key end

     0   :  { %v790_v32 = vmov 0   ;;  %s992_s1 = inlined_call_operand.vmem [shape: bf16[128,128], index: 1, kind: input, shape index: {}]   ;;  %s993_s0 = inlined_call_operand.vmem [shape: bf16[128,128], index: 0, kind: input, shape index: {}]   ;;  %s994_s3 = inlined_call_operand.vmem [shape: bf16[128,256], index: 3, kind: input, shape index: {}]   ;;  %s995_s2 = inlined_call_operand.vmem [shape: f32[1,128], index: 2, kind: input, shape index: {}]   ;;  %s996_s5 = inlined_call_operand.vmem [shape: f32[128,128], index: 5, kind: output, shape index: {1}]   ;;  %s997_s4 = inlined_call_operand.vmem [shape: bf16[128,128], index: 4, kind: output, shape index: {0}]  }
   0x1   :  { %v750_v0 = vld [vmem:[%s992_s1] sm:$0xff]   ;;  %v751_v1 = vld [vmem:[%s992_s1 + $0x8] sm:$0xff]   ;;  %v752_v2 = vld [vmem:[%s992_s1 + $0x10] sm:$0xff]   ;;  %408 = vmatprep.mubr.bf16.mxu1 %v790_v32 }
   0x2   :  { %701 = vmatprep.subr.bf16.mxu0 %v750_v0  ;;  %v753_v3 = vld [vmem:[%s992_s1 + $0x18] sm:$0xff]   ;;  %v758_v4 = vld [vmem:[%s993_s0] sm:$0xff]   ;;  %v755_v6 = vld [vmem:[%s992_s1 + $0x28] sm:$0xff]  }
   0x3   :  { %702 = vmatpush3.bf16.msra.mxu0 %v750_v0  ;;  %717 = vmatprep.mubr.bf16.mxu0 %v758_v4  ;;  %v754_v5 = vld [vmem:[%s992_s1 + $0x20] sm:$0xff]   ;;  %v771_v9 = vld [vmem:[%s994_s3 + $0x14] ss:$8 sps:$4 sm:$0xff]   ;;  %v769_v11 = vld [vmem:[%s994_s3 + $0x10] ss:$8 sps:$4 sm:$0xff]  }
   0x4   :  { %703 = vmatprep.subr.bf16.mxu0 %v751_v1  ;;  %v768_v7 = vld [vmem:[%s994_s3 + $0x4] ss:$8 sps:$4 sm:$0xff]   ;;  %v766_v8 = vld [vmem:[%s994_s3] ss:$8 sps:$4 sm:$0xff]   ;;  %v756_v10 = vld [vmem:[%s992_s1 + $0x30] sm:$0xff]  }
   0x5   :  { %733 = vmatprep.subr.bf16.mxu1 %v768_v7  ;;  %v757_v12 = vld [vmem:[%s992_s1 + $0x38] sm:$0xff]   ;;  %v774_v13 = vld [vmem:[%s994_s3 + $0x24] ss:$8 sps:$4 sm:$0xff]   ;;  %v772_v14 = vld [vmem:[%s994_s3 + $0x20] ss:$8 sps:$4 sm:$0xff]  }
   0x6   :  { %741 = vmatpush1.bf16.msra.mxu1 %v766_v8  ;;  %v777_v15 = vld [vmem:[%s994_s3 + $0x34] ss:$8 sps:$4 sm:$0xff]   ;;  %v759_v16 = vld [vmem:[%s993_s0 + $0x8] sm:$0xff]   ;;  %v775_v17 = vld [vmem:[%s994_s3 + $0x30] ss:$8 sps:$4 sm:$0xff]  }
   0x7   :  { %704 = vmatpush3.bf16.msra.mxu0 %v751_v1  ;;  %734 = vmatprep.subr.bf16.mxu1 %v771_v9  ;;  %v760_v18 = vld [vmem:[%s993_s0 + $0x10] sm:$0xff]   ;;  %v780_v19 = vld [vmem:[%s994_s3 + $0x44] ss:$8 sps:$4 sm:$0xff]   ;;  %v778_v20 = vld [vmem:[%s994_s3 + $0x40] ss:$8 sps:$4 sm:$0xff]  }
   0x8   :  { %705 = vmatprep.subr.bf16.mxu0 %v752_v2  ;;  %v783_v21 = vld [vmem:[%s994_s3 + $0x54] ss:$8 sps:$4 sm:$0xff]   ;;  %v781_v23 = vld [vmem:[%s994_s3 + $0x50] ss:$8 sps:$4 sm:$0xff]   ;;  %v762_v24 = vld [vmem:[%s993_s0 + $0x20] sm:$0xff]  }
   0x9   :  { %v761_v22 = vld [vmem:[%s993_s0 + $0x18] sm:$0xff]   ;;  %v763_v25 = vld [vmem:[%s993_s0 + $0x28] sm:$0xff]   ;;  %v764_v26 = vld [vmem:[%s993_s0 + $0x30] sm:$0xff]  }
   0xa   :  { %742 = vmatpush1.bf16.msra.mxu1 %v769_v11  ;;  %v765_v27 = vld [vmem:[%s993_s0 + $0x38] sm:$0xff]   ;;  %v786_v28 = vld [vmem:[%s994_s3 + $0x64] ss:$8 sps:$4 sm:$0xff]   ;;  %v784_v29 = vld [vmem:[%s994_s3 + $0x60] ss:$8 sps:$4 sm:$0xff]  }
   0xb   :  { %706 = vmatpush3.bf16.msra.mxu0 %v752_v2  ;;  %735 = vmatprep.subr.bf16.mxu1 %v774_v13  ;;  %v789_v30 = vld [vmem:[%s994_s3 + $0x74] ss:$8 sps:$4 sm:$0xff]   ;;  %v787_v31 = vld [vmem:[%s994_s3 + $0x70] ss:$8 sps:$4 sm:$0xff]   ;;  %v573_v34 = vld [vmem:[%s995_s2] ss:$0 sm:$0xff] }
   0xc   :  { %707 = vmatprep.subr.bf16.mxu0 %v753_v3 }
   0xe   :  { %743 = vmatpush1.bf16.msra.mxu1 %v772_v14 }
   0xf   :  { %708 = vmatpush3.bf16.msra.mxu0 %v753_v3  ;;  %736 = vmatprep.subr.bf16.mxu1 %v777_v15 }
  0x10   :  { %709 = vmatprep.subr.bf16.mxu0 %v754_v5 }
  0x12   :  { %744 = vmatpush1.bf16.msra.mxu1 %v775_v17 }
  0x13   :  { %710 = vmatpush3.bf16.msra.mxu0 %v754_v5  ;;  %737 = vmatprep.subr.bf16.mxu1 %v780_v19 }
  0x14   :  { %711 = vmatprep.subr.bf16.mxu0 %v755_v6 }
  0x16   :  { %745 = vmatpush1.bf16.msra.mxu1 %v778_v20 }
  0x17   :  { %712 = vmatpush3.bf16.msra.mxu0 %v755_v6  ;;  %738 = vmatprep.subr.bf16.mxu1 %v783_v21 }
  0x18   :  { %713 = vmatprep.subr.bf16.mxu0 %v756_v10 }
  0x1a   :  { %746 = vmatpush1.bf16.msra.mxu1 %v781_v23 }
  0x1b   :  { %714 = vmatpush3.bf16.msra.mxu0 %v756_v10  ;;  %739 = vmatprep.subr.bf16.mxu1 %v786_v28 }
  0x1c   :  { %715 = vmatprep.subr.bf16.mxu0 %v757_v12 }
  0x1e   :  { %747 = vmatpush1.bf16.msra.mxu1 %v784_v29 }
  0x1f   :  { %716 = vmatpush3.bf16.msra.mxu0 %v757_v12  ;;  %740 = vmatprep.subr.bf16.mxu1 %v789_v30 }
  0x20   :  { %356 = vmatprep.subr.bf16.mxu0 %v768_v7 }
  0x22   :  { %718 = vmatmul.mubr.bf16.vlgmr.msra.gmra.mrb[0].mxu0 %v759_v16  ;;  %748 = vmatpush1.bf16.msra.mxu1 %v787_v31 }
  0x23   :  { %721 = vmatprep.mubr.bf16.mxu0 %v760_v18  ;;  %357 = vmatpush1.bf16.msra.mxu0 %v766_v8 }
  0x24   :  { %358 = vmatprep.subr.bf16.mxu0 %v771_v9 }
  0x27   :  { %359 = vmatpush1.bf16.msra.mxu0 %v769_v11 }
  0x28   :  { %360 = vmatprep.subr.bf16.mxu0 %v774_v13 }
  0x2a   :  { %722 = vmatmul.mubr.bf16.gmra.mrb[4].mxu0 %v761_v22 }
  0x2b   :  { %725 = vmatprep.mubr.bf16.mxu0 %v762_v24  ;;  %361 = vmatpush1.bf16.msra.mxu0 %v772_v14 }
  0x2c   :  { %362 = vmatprep.subr.bf16.mxu0 %v777_v15 }
  0x2f   :  { %363 = vmatpush1.bf16.msra.mxu0 %v775_v17 }
  0x30   :  { %364 = vmatprep.subr.bf16.mxu0 %v780_v19 }
  0x32   :  { %726 = vmatmul.mubr.bf16.gmra.mrb[8].mxu0 %v763_v25 }
  0x33   :  { %729 = vmatprep.mubr.bf16.mxu0 %v764_v26  ;;  %365 = vmatpush1.bf16.msra.mxu0 %v778_v20 }
  0x34   :  { %366 = vmatprep.subr.bf16.mxu0 %v783_v21 }
  0x37   :  { %367 = vmatpush1.bf16.msra.mxu0 %v781_v23 }
  0x38   :  { %368 = vmatprep.subr.bf16.mxu0 %v786_v28 }
  0x3a   :  { %730 = vmatmul.mubr.bf16.gmra.mrb[12].mxu0 %v765_v27 }
  0x3b   :  { %369 = vmatpush1.bf16.msra.mxu0 %v784_v29  ;;  %388 = vmatprep.mubr.bf16.mxu0 %v790_v32 }
  0x3c   :  { %370 = vmatprep.subr.bf16.mxu0 %v789_v30 }
  0x3f   :  { %371 = vmatpush1.bf16.msra.mxu0 %v787_v31 }
  0xf5   :  { %v719_v33 = vpop.f32.mrb[0].mxu0 }
  0xf6   :  { %v189_v35 = vpop.f32.mrb[1].mxu0  ;;  %v198_v37 = vadd.f32 %v719_v33, %v573_v34 }
  0xf7   :  { %v720_v36 = vpop.f32.mrb[2].mxu0  ;;  %v190_v40 = vadd.f32 %v573_v34, %v189_v35 }
  0xf8   :  { %v201_v38 = vadd.f32 %v720_v36, %v573_v34  ;;  %v192_v39 = vpop.f32.mrb[3].mxu0 }
  0xf9   :  { %v193_v41 = vadd.f32 %v573_v34, %v192_v39 }
  0xfa   :  { %v253_v42 = vpack.c.bf16 %v201_v38, %v198_v37 }
  0xfb   :  { %v252_v43 = vpack.c.bf16 %v193_v41, %v190_v40 }
  0xfd   :  { %v723_v44 = vpop.f32.mrb[4].mxu0  ;;  %389 = vmatmul.mubr.bf16.vlgmr.msra.gmra.mrb[16].mxu0 %v252_v43 }
  0xfe   :  { %v205_v45 = vpop.f32.mrb[5].mxu0  ;;  %398 = vmatprep.mubr.bf16.mxu0 %v790_v32  ;;  %v214_v47 = vadd.f32 %v723_v44, %v573_v34 }
  0xff   :  { %v724_v46 = vpop.f32.mrb[6].mxu0  ;;  %v206_v50 = vadd.f32 %v573_v34, %v205_v45 }
 0x100   :  { %v217_v48 = vadd.f32 %v724_v46, %v573_v34  ;;  %v208_v49 = vpop.f32.mrb[7].mxu0 }
 0x101   :  { %v209_v51 = vadd.f32 %v573_v34, %v208_v49 }
 0x102   :  { %v255_v52 = vpack.c.bf16 %v217_v48, %v214_v47 }
 0x103   :  { %v254_v53 = vpack.c.bf16 %v209_v51, %v206_v50 }
 0x105   :  { %399 = vmatmul.mubr.bf16.gmra.mrb[20].mxu0 %v253_v42  ;;  %409 = vmatmul.mubr.bf16.vlgmr.msra.gmra.mrb[0].mxu1 %v254_v53  ;;  %v727_v54 = vpop.f32.mrb[8].mxu0 }
 0x106   :  { %v230_v55 = vadd.f32 %v727_v54, %v573_v34  ;;  %v221_v56 = vpop.f32.mrb[9].mxu0  ;;  %418 = vmatprep.mubr.bf16.mxu1 %v790_v32 }
 0x107   :  { %v222_v57 = vadd.f32 %v573_v34, %v221_v56  ;;  %v728_v58 = vpop.f32.mrb[10].mxu0 }
 0x108   :  { %v233_v59 = vadd.f32 %v728_v58, %v573_v34  ;;  %v224_v60 = vpop.f32.mrb[11].mxu0 }
 0x109   :  { %v225_v61 = vadd.f32 %v573_v34, %v224_v60 }
 0x10a   :  { %v257_v62 = vpack.c.bf16 %v233_v59, %v230_v55 }
 0x10b   :  { %v256_v63 = vpack.c.bf16 %v225_v61, %v222_v57 }
 0x10d   :  { %419 = vmatmul.mubr.bf16.gmra.mrb[4].mxu1 %v255_v52  ;;  %v731_v0 = vpop.f32.mrb[12].mxu0 }
 0x10e   :  { %428 = vmatprep.mubr.bf16.mxu1 %v790_v32  ;;  %v246_v1 = vadd.f32 %v731_v0, %v573_v34  ;;  %v237_v2 = vpop.f32.mrb[13].mxu0 }
 0x10f   :  { %v238_v3 = vadd.f32 %v573_v34, %v237_v2  ;;  %v732_v4 = vpop.f32.mrb[14].mxu0 }
 0x110   :  { %v249_v5 = vadd.f32 %v732_v4, %v573_v34  ;;  %v240_v6 = vpop.f32.mrb[15].mxu0 }
 0x111   :  { %v241_v7 = vadd.f32 %v573_v34, %v240_v6 }
 0x112   :  { %v259_v8 = vpack.c.bf16 %v249_v5, %v246_v1 }
 0x113   :  { %v258_v9 = vpack.c.bf16 %v241_v7, %v238_v3 }
 0x115   :  { %429 = vmatmul.mubr.bf16.gmra.mrb[8].mxu1 %v256_v63 }
 0x116   :  { %438 = vmatprep.mubr.bf16.mxu1 %v790_v32 }
 0x11d   :  { %439 = vmatmul.mubr.bf16.gmra.mrb[12].mxu1 %v257_v62 }
 0x11e   :  { %448 = vmatprep.mubr.bf16.mxu1 %v790_v32 }
 0x125   :  { %449 = vmatmul.mubr.bf16.gmra.mrb[16].mxu1 %v258_v9 }
 0x126   :  { %458 = vmatprep.mubr.bf16.mxu1 %v790_v32 }
 0x12d   :  { %459 = vmatmul.mubr.bf16.gmra.mrb[20].mxu1 %v259_v8 }
 0x1d0   :  { %v390_v10 = vpop.f32.mrb[16].mxu0 }
 0x1d1   :  { %v392_v11 = vpop.f32.mrb[17].mxu0 }
 0x1d2   :  { %549 = vst [vmem:[%s996_s5] sm:$0xff] %v392_v11  ;;  %v394_v12 = vpop.f32.mrb[18].mxu0 }
 0x1d3   :  { %v641_v13 = vpack.c.bf16 %v394_v12, %v390_v10  ;;  %v396_v14 = vpop.f32.mrb[19].mxu0 }
 0x1d4   :  { %550 = vst [vmem:[%s996_s5 + $0x8] sm:$0xff] %v396_v14 }
 0x1d5   :  { %642 = vst [vmem:[%s997_s4] sm:$0xff] %v641_v13  }
 0x1d8   :  { %v400_v15 = vpop.f32.mrb[20].mxu0  ;;  %v410_v16 = vpop.f32.mrb[0].mxu1 }
 0x1d9   :  { %v402_v17 = vpop.f32.mrb[21].mxu0  ;;  %v412_v18 = vpop.f32.mrb[1].mxu1 }
 0x1da   :  { %551 = vst [vmem:[%s996_s5 + $0x10] sm:$0xff] %v402_v17  ;;  %553 = vst [vmem:[%s996_s5 + $0x20] sm:$0xff] %v412_v18  ;;  %v404_v19 = vpop.f32.mrb[22].mxu0  ;;  %v414_v20 = vpop.f32.mrb[2].mxu1 }
 0x1db   :  { %v646_v21 = vpack.c.bf16 %v404_v19, %v400_v15  ;;  %v651_v22 = vpack.c.bf16 %v414_v20, %v410_v16  ;;  %v406_v23 = vpop.f32.mrb[23].mxu0  ;;  %v416_v24 = vpop.f32.mrb[3].mxu1 }
 0x1dc   :  { %552 = vst [vmem:[%s996_s5 + $0x18] sm:$0xff] %v406_v23  ;;  %554 = vst [vmem:[%s996_s5 + $0x28] sm:$0xff] %v416_v24 }
 0x1dd   :  { %678 = vst [vmem:[%s997_s4 + $0x8] sm:$0xff] %v646_v21   ;;  %679 = vst [vmem:[%s997_s4 + $0x10] sm:$0xff] %v651_v22  }
 0x1e0   :  { %v420_v25 = vpop.f32.mrb[4].mxu1 }
 0x1e1   :  { %v422_v26 = vpop.f32.mrb[5].mxu1 }
 0x1e2   :  { %555 = vst [vmem:[%s996_s5 + $0x30] sm:$0xff] %v422_v26  ;;  %v424_v27 = vpop.f32.mrb[6].mxu1 }
 0x1e3   :  { %v656_v28 = vpack.c.bf16 %v424_v27, %v420_v25  ;;  %v426_v29 = vpop.f32.mrb[7].mxu1 }
 0x1e4   :  { %556 = vst [vmem:[%s996_s5 + $0x38] sm:$0xff] %v426_v29 }
 0x1e5   :  { %680 = vst [vmem:[%s997_s4 + $0x18] sm:$0xff] %v656_v28  }
 0x1e8   :  { %v430_v30 = vpop.f32.mrb[8].mxu1 }
 0x1e9   :  { %v432_v31 = vpop.f32.mrb[9].mxu1 }
 0x1ea   :  { %557 = vst [vmem:[%s996_s5 + $0x40] sm:$0xff] %v432_v31  ;;  %v434_v32 = vpop.f32.mrb[10].mxu1 }
 0x1eb   :  { %v661_v33 = vpack.c.bf16 %v434_v32, %v430_v30  ;;  %v436_v34 = vpop.f32.mrb[11].mxu1 }
 0x1ec   :  { %558 = vst [vmem:[%s996_s5 + $0x48] sm:$0xff] %v436_v34 }
 0x1ed   :  { %681 = vst [vmem:[%s997_s4 + $0x20] sm:$0xff] %v661_v33  }
 0x1f0   :  { %v440_v35 = vpop.f32.mrb[12].mxu1 }
 0x1f1   :  { %v442_v36 = vpop.f32.mrb[13].mxu1 }
 0x1f2   :  { %559 = vst [vmem:[%s996_s5 + $0x50] sm:$0xff] %v442_v36  ;;  %v444_v37 = vpop.f32.mrb[14].mxu1 }
 0x1f3   :  { %v666_v38 = vpack.c.bf16 %v444_v37, %v440_v35  ;;  %v446_v39 = vpop.f32.mrb[15].mxu1 }
 0x1f4   :  { %560 = vst [vmem:[%s996_s5 + $0x58] sm:$0xff] %v446_v39 }
 0x1f5   :  { %682 = vst [vmem:[%s997_s4 + $0x28] sm:$0xff] %v666_v38  }
 0x1f8   :  { %v450_v40 = vpop.f32.mrb[16].mxu1 }
 0x1f9   :  { %v452_v41 = vpop.f32.mrb[17].mxu1 }
 0x1fa   :  { %561 = vst [vmem:[%s996_s5 + $0x60] sm:$0xff] %v452_v41  ;;  %v454_v42 = vpop.f32.mrb[18].mxu1 }
 0x1fb   :  { %v671_v43 = vpack.c.bf16 %v454_v42, %v450_v40  ;;  %v456_v44 = vpop.f32.mrb[19].mxu1 }
 0x1fc   :  { %562 = vst [vmem:[%s996_s5 + $0x68] sm:$0xff] %v456_v44 }
 0x1fd   :  { %683 = vst [vmem:[%s997_s4 + $0x30] sm:$0xff] %v671_v43  }
 0x200   :  { %v460_v45 = vpop.f32.mrb[20].mxu1 }
 0x201   :  { %v462_v46 = vpop.f32.mrb[21].mxu1 }
 0x202   :  { %563 = vst [vmem:[%s996_s5 + $0x70] sm:$0xff] %v462_v46  ;;  %v464_v47 = vpop.f32.mrb[22].mxu1 }
 0x203   :  { %v676_v48 = vpack.c.bf16 %v464_v47, %v460_v45  ;;  %v466_v49 = vpop.f32.mrb[23].mxu1 }
 0x204   :  { %564 = vst [vmem:[%s996_s5 + $0x78] sm:$0xff] %v466_v49 }
 0x205   :  { %684 = vst [vmem:[%s997_s4 + $0x38] sm:$0xff] %v676_v48  }

// kernel: gnn_forward.15
= control target key start
LH: loop header
LB: loop body
LE: loop exit
PB: predicated region body
PF: predicated region fallthrough
CT: control target
= control target key end

     0   :  { %v192_v3 = vmov 0.0   ;;  %v15_v18 = vlaneseq  ;;  %v193_v52 = vmov 1966171168   ;;  %s273_s1 = inlined_call_operand.vmem [shape: f32[128,128], index: 1, kind: input, shape index: {}]   ;;  %s274_s0 = inlined_call_operand.vmem [shape: f32[1,128], index: 0, kind: input, shape index: {}]   ;;  %s275_s2 = inlined_call_operand.vmem [shape: f32[1,256], index: 2, kind: output, shape index: {}]  }
   0x1   :  { %v20_v0 = vld [vmem:[%s273_s1] sm:$0xff]  ;;  %v21_v1 = vld [vmem:[%s273_s1 + $0x8] sm:$0xff]  ;;  %v22_v2 = vld [vmem:[%s273_s1 + $0x10] sm:$0xff]  ;;  %118 = vmatprep.mubr.f32.mxu0 %v192_v3  ;;  %v129_v53 = vunpack.c.l.s4 %v193_v52 }
   0x2   :  { %v38_v4 = vmul.f32 %v20_v0, %v20_v0  ;;  %v39_v5 = vmul.f32 %v21_v1, %v21_v1  ;;  %v23_v6 = vld [vmem:[%s273_s1 + $0x18] sm:$0xff]  ;;  %v40_v7 = vmul.f32 %v22_v2, %v22_v2  ;;  %v24_v8 = vld [vmem:[%s273_s1 + $0x20] sm:$0xff]  ;;  %v25_v9 = vld [vmem:[%s273_s1 + $0x28] sm:$0xff]  ;;  %v160_v10 = vpack.c.bf16 %v21_v1, %v20_v0 }
   0x3   :  { %v41_v11 = vmul.f32 %v23_v6, %v23_v6  ;;  %v42_v13 = vmul.f32 %v24_v8, %v24_v8  ;;  %v43_v14 = vmul.f32 %v25_v9, %v25_v9  ;;  %v26_v16 = vld [vmem:[%s273_s1 + $0x30] sm:$0xff]  ;;  %v27_v17 = vld [vmem:[%s273_s1 + $0x38] sm:$0xff]  ;;  %v164_v19 = vpack.c.bf16 %v23_v6, %v22_v2  ;;  %v28_v23 = vld [vmem:[%s273_s1 + $0x40] sm:$0xff] }
   0x4   :  { %v158_v12 = vpack.c.bf16 %v39_v5, %v38_v4  ;;  %v44_v21 = vmul.f32 %v26_v16, %v26_v16  ;;  %v45_v22 = vmul.f32 %v27_v17, %v27_v17  ;;  %v29_v24 = vld [vmem:[%s273_s1 + $0x48] sm:$0xff]  ;;  %vm239_vm0 = vcmp.lt.s32.totalorder %v15_v18, 256  ;;  %v30_v30 = vld [vmem:[%s273_s1 + $0x50] sm:$0xff]  ;;  %v31_v31 = vld [vmem:[%s273_s1 + $0x58] sm:$0xff] }
   0x5   :  { %v162_v15 = vpack.c.bf16 %v41_v11, %v40_v7  ;;  %v166_v20 = vpack.c.bf16 %v43_v14, %v42_v13  ;;  %19 = vst.msk [vmem:[#allocation2] sm:$0x3] %vm239_vm0, %v192_v3  ;;  %v168_v26 = vpack.c.bf16 %v25_v9, %v24_v8  ;;  %v46_v28 = vmul.f32 %v28_v23, %v28_v23  ;;  %v32_v36 = vld [vmem:[%s273_s1 + $0x60] sm:$0xff]  ;;  %v33_v37 = vld [vmem:[%s273_s1 + $0x68] sm:$0xff]  ;;  %v34_v42 = vld [vmem:[%s273_s1 + $0x70] sm:$0xff] }
   0x6   :  { %159 = vmatprep.subr.bf16.mxu0 %v158_v12  ;;  %v170_v27 = vpack.c.bf16 %v45_v22, %v44_v21  ;;  %v47_v29 = vmul.f32 %v29_v24, %v29_v24  ;;  %v172_v32 = vpack.c.bf16 %v27_v17, %v26_v16  ;;  %v48_v34 = vmul.f32 %v30_v30, %v30_v30  ;;  %v35_v43 = vld [vmem:[%s273_s1 + $0x78] sm:$0xff]  ;;  %v37_v51 = vld [vmem:[%s274_s0] sm:$0x1] }
   0x7   :  { %161 = vmatpush1.bf16.msra.mxu0 %v160_v10  ;;  %v49_v35 = vmul.f32 %v31_v31, %v31_v31  ;;  %v176_v38 = vpack.c.bf16 %v29_v24, %v28_v23  ;;  %v50_v40 = vmul.f32 %v32_v36, %v32_v36  ;;  %v51_v41 = vmul.f32 %v33_v37, %v33_v37 }
   0x8   :  { %163 = vmatprep.subr.bf16.mxu0 %v162_v15  ;;  %v174_v33 = vpack.c.bf16 %v47_v29, %v46_v28  ;;  %v180_v44 = vpack.c.bf16 %v31_v31, %v30_v30  ;;  %v52_v46 = vmul.f32 %v34_v42, %v34_v42  ;;  %v53_v47 = vmul.f32 %v35_v43, %v35_v43 }
   0x9   :  { %v178_v39 = vpack.c.bf16 %v49_v35, %v48_v34  ;;  %v182_v45 = vpack.c.bf16 %v51_v41, %v50_v40  ;;  %v184_v48 = vpack.c.bf16 %v33_v37, %v32_v36  ;;  %v188_v50 = vpack.c.bf16 %v35_v43, %v34_v42 }
   0xa   :  { %v186_v49 = vpack.c.bf16 %v53_v47, %v52_v46  ;;  %v130_v54 = vunpack.c.0.s8 %v129_v53  ;;  %v132_v55 = vshrl.u32 %v15_v18, 7 }
   0xb   :  { %165 = vmatpush1.bf16.msra.mxu0 %v164_v19 }
   0xc   :  { %167 = vmatprep.subr.bf16.mxu0 %v166_v20  ;;  %v133_v57 = vsub.s32 %v130_v54, %v132_v55  ;;  %v36_v61 = vld [vmem:[#allocation2] sm:$0x3] }
   0xf   :  { %169 = vmatpush1.bf16.msra.mxu0 %v168_v26 }
  0x10   :  { %171 = vmatprep.subr.bf16.mxu0 %v170_v27 }
  0x13   :  { %173 = vmatpush1.bf16.msra.mxu0 %v172_v32 }
  0x14   :  { %175 = vmatprep.subr.bf16.mxu0 %v174_v33 }
  0x17   :  { %177 = vmatpush1.bf16.msra.mxu0 %v176_v38 }
  0x18   :  { %179 = vmatprep.subr.bf16.mxu0 %v178_v39 }
  0x1b   :  { %181 = vmatpush1.bf16.msra.mxu0 %v180_v44 }
  0x1c   :  { %183 = vmatprep.subr.bf16.mxu0 %v182_v45 }
  0x1f   :  { %185 = vmatpush1.bf16.msra.mxu0 %v184_v48 }
  0x20   :  { %187 = vmatprep.subr.bf16.mxu0 %v186_v49 }
  0x23   :  { %189 = vmatpush1.bf16.msra.mxu0 %v188_v50 }
  0x26   :  { %119 = vmatmul.mubr.f32.vlgmr.msra.gmra.mrb[0].mxu0 %v37_v51 }
  0xf9   :  { %v120_v56 = vpop.f32.mrb[0].mxu0 }
  0xfa   :  { %v122_v58 = vpop.f32.mrb[1].mxu0 }
  0xfb   :  { %v127_v59 = vcombine.low %v120_v56, %v122_v58 }
  0xfd   :  { %v134_v60 = vrot.slane %v127_v59, %v133_v57 }
  0xff   :  { %v141_v62 = vrot.slane %v134_v60, %v133_v57 }
 0x101   :  { %v143_v63 = vadd.f32 %v141_v62, %v36_v61 }
 0x103   :  { %148 = vst.msk [vmem:[#allocation2] sm:$0x3] %vm239_vm0, %v143_v63 }
 0x10a   :  { %v152_v0 = vld [vmem:[#allocation2] sm:$0x3] }
 0x10b   :  { %153 = vst.msk [vmem:[%s275_s2] sm:$0x3] %vm239_vm0, %v152_v0 }

// kernel: gnn_forward.14
= control target key start
LH: loop header
LB: loop body
LE: loop exit
PB: predicated region body
PF: predicated region fallthrough
CT: control target
= control target key end

     0   :  { %v620_v1 = vmov 0   ;;  %s882_s1 = inlined_call_operand.vmem [shape: bf16[128,128], index: 1, kind: input, shape index: {}]   ;;  %s883_s0 = inlined_call_operand.vmem [shape: bf16[128,128], index: 0, kind: input, shape index: {}]   ;;  %s884_s3 = inlined_call_operand.vmem [shape: f32[128,1], index: 3, kind: input, shape index: {}]   ;;  %s885_s2 = inlined_call_operand.vmem [shape: f32[128,128], index: 2, kind: input, shape index: {}]   ;;  %s886_s4 = inlined_call_operand.vmem [shape: f32[1,128], index: 4, kind: input, shape index: {}]   ;;  %s887_s5 = inlined_call_operand.vmem [shape: f32[128,128], index: 5, kind: output, shape index: {}]  }
   0x1   :  { %v604_v0 = vld [vmem:[%s882_s1] sm:$0xff]   ;;  %603 = vset.pattern.permute.xlu1 %v620_v1  ;;  %602 = vset.pattern.permute.xlu0 %v620_v1  ;;  %v605_v2 = vld [vmem:[%s882_s1 + $0x8] sm:$0xff]   ;;  %v606_v3 = vld [vmem:[%s882_s1 + $0x10] sm:$0xff]  }
   0x2   :  { %553 = vmatprep.subr.bf16.mxu0 %v604_v0  ;;  %585 = vmatprep.subr.bf16.mxu1 %v604_v0  ;;  %v607_v4 = vld [vmem:[%s882_s1 + $0x18] sm:$0xff]   ;;  %v612_v5 = vld [vmem:[%s883_s0] sm:$0xff]   ;;  %v609_v8 = vld [vmem:[%s882_s1 + $0x28] sm:$0xff]  }
   0x3   :  { %554 = vmatpush3.bf16.msra.mxu0 %v604_v0  ;;  %593 = vmatpush3.bf16.msra.mxu1 %v604_v0  ;;  %v613_v6 = vld [vmem:[%s883_s0 + $0x20] sm:$0xff]   ;;  %v335_v9 = vld [vmem:[%s884_s3 + $0x10] sm:$0xff]  ;;  %v336_v11 = vld [vmem:[%s884_s3 + $0x18] sm:$0xff] }
   0x4   :  { %555 = vmatprep.subr.bf16.mxu0 %v605_v2  ;;  %586 = vmatprep.subr.bf16.mxu1 %v605_v2  ;;  %v608_v7 = vld [vmem:[%s882_s1 + $0x20] sm:$0xff]   ;;  %v334_v12 = vld [vmem:[%s884_s3 + $0x8] sm:$0xff]  ;;  %v610_v13 = vld [vmem:[%s882_s1 + $0x30] sm:$0xff]  }
   0x5   :  { %569 = vmatprep.mubr.bf16.mxu0 %v612_v5  ;;  %577 = vmatprep.mubr.bf16.mxu1 %v613_v6  ;;  %v333_v10 = vld [vmem:[%s884_s3] sm:$0xff]  ;;  %v338_v14 = vld [vmem:[%s884_s3 + $0x28] sm:$0xff]  ;;  %v611_v16 = vld [vmem:[%s882_s1 + $0x38] sm:$0xff]  }
   0x6   :  { %361 = vperm.xlu1 %603, %v335_v9   ;;  %351 = vperm.xlu0 %602, %v333_v10   ;;  %v337_v15 = vld [vmem:[%s884_s3 + $0x20] sm:$0xff]  ;;  %v340_v17 = vld [vmem:[%s884_s3 + $0x38] sm:$0xff]  ;;  %v339_v18 = vld [vmem:[%s884_s3 + $0x30] sm:$0xff] }
   0x7   :  { %556 = vmatpush3.bf16.msra.mxu0 %v605_v2  ;;  %594 = vmatpush3.bf16.msra.mxu1 %v605_v2  ;;  %v614_v19 = vld [vmem:[%s883_s0 + $0x8] sm:$0xff]   ;;  %v341_v22 = vld [vmem:[%s884_s3 + $0x40] sm:$0xff]  ;;  %v616_v23 = vld [vmem:[%s883_s0 + $0x10] sm:$0xff]  }
   0x8   :  { %557 = vmatprep.subr.bf16.mxu0 %v606_v3  ;;  %587 = vmatprep.subr.bf16.mxu1 %v606_v3  ;;  %v615_v20 = vld [vmem:[%s883_s0 + $0x28] sm:$0xff]   ;;  %v617_v24 = vld [vmem:[%s883_s0 + $0x30] sm:$0xff]   ;;  %v344_v25 = vld [vmem:[%s884_s3 + $0x58] sm:$0xff] }
   0x9   :  { %v342_v21 = vld [vmem:[%s884_s3 + $0x48] sm:$0xff]  ;;  %v343_v26 = vld [vmem:[%s884_s3 + $0x50] sm:$0xff]  ;;  %v618_v27 = vld [vmem:[%s883_s0 + $0x18] sm:$0xff]  }
   0xa   :  { %366 = vperm.xlu1 %603, %v336_v11   ;;  %356 = vperm.xlu0 %602, %v334_v12   ;;  %v619_v28 = vld [vmem:[%s883_s0 + $0x38] sm:$0xff]   ;;  %v346_v29 = vld [vmem:[%s884_s3 + $0x68] sm:$0xff]  ;;  %v345_v30 = vld [vmem:[%s884_s3 + $0x60] sm:$0xff] }
   0xb   :  { %558 = vmatpush3.bf16.msra.mxu0 %v606_v3  ;;  %595 = vmatpush3.bf16.msra.mxu1 %v606_v3  ;;  %v348_v31 = vld [vmem:[%s884_s3 + $0x78] sm:$0xff]  ;;  %v347_v32 = vld [vmem:[%s884_s3 + $0x70] sm:$0xff]  ;;  %v445_v54 = vld [vmem:[%s885_s2] sm:$0xff] }
   0xc   :  { %559 = vmatprep.subr.bf16.mxu0 %v607_v4  ;;  %588 = vmatprep.subr.bf16.mxu1 %v607_v4  ;;  %v447_v48 = vld [vmem:[%s885_s2 + $0x10] sm:$0xff]  ;;  %v453_v56 = vld [vmem:[%s885_s2 + $0x40] sm:$0xff]  ;;  %v448_v61 = vld [vmem:[%s885_s2 + $0x18] sm:$0xff] }
   0xd   :  { %v455_v50 = vld [vmem:[%s885_s2 + $0x50] sm:$0xff]  ;;  %v774_v57 = vld [vmem:[%s886_s4] ss:$0 sm:$0xff]  ;;  %v456_v63 = vld [vmem:[%s885_s2 + $0x58] sm:$0xff] }
   0xe   :  { %376 = vperm.xlu1 %603, %v338_v14   ;;  %371 = vperm.xlu0 %602, %v337_v15   ;;  %v446_v5 = vld [vmem:[%s885_s2 + $0x8] sm:$0xff] }
   0xf   :  { %560 = vmatpush3.bf16.msra.mxu0 %v607_v4  ;;  %596 = vmatpush3.bf16.msra.mxu1 %v607_v4 }
  0x10   :  { %561 = vmatprep.subr.bf16.mxu0 %v608_v7  ;;  %589 = vmatprep.subr.bf16.mxu1 %v608_v7 }
  0x12   :  { %386 = vperm.xlu1 %603, %v340_v17   ;;  %381 = vperm.xlu0 %602, %v339_v18  }
  0x13   :  { %562 = vmatpush3.bf16.msra.mxu0 %v608_v7  ;;  %597 = vmatpush3.bf16.msra.mxu1 %v608_v7  ;;  %v454_v7 = vld [vmem:[%s885_s2 + $0x48] sm:$0xff] }
  0x14   :  { %563 = vmatprep.subr.bf16.mxu0 %v609_v8  ;;  %590 = vmatprep.subr.bf16.mxu1 %v609_v8 }
  0x16   :  { %396 = vperm.xlu1 %603, %v342_v21   ;;  %391 = vperm.xlu0 %602, %v341_v22  }
  0x17   :  { %564 = vmatpush3.bf16.msra.mxu0 %v609_v8  ;;  %598 = vmatpush3.bf16.msra.mxu1 %v609_v8 }
  0x18   :  { %565 = vmatprep.subr.bf16.mxu0 %v610_v13  ;;  %591 = vmatprep.subr.bf16.mxu1 %v610_v13 }
  0x1a   :  { %406 = vperm.xlu1 %603, %v344_v25   ;;  %401 = vperm.xlu0 %602, %v343_v26  }
  0x1b   :  { %566 = vmatpush3.bf16.msra.mxu0 %v610_v13  ;;  %599 = vmatpush3.bf16.msra.mxu1 %v610_v13 }
  0x1c   :  { %567 = vmatprep.subr.bf16.mxu0 %v611_v16  ;;  %592 = vmatprep.subr.bf16.mxu1 %v611_v16 }
  0x1e   :  { %416 = vperm.xlu1 %603, %v346_v29   ;;  %411 = vperm.xlu0 %602, %v345_v30   ;;  %v459_v29 = vld [vmem:[%s885_s2 + $0x70] sm:$0xff] }
  0x1f   :  { %568 = vmatpush3.bf16.msra.mxu0 %v611_v16  ;;  %600 = vmatpush3.bf16.msra.mxu1 %v611_v16 }
  0x22   :  { %570 = vmatmul.mubr.bf16.vlgmr.msra.gmra.mrb[0].mxu0 %v614_v19  ;;  %578 = vmatmul.mubr.bf16.vlgmr.msra.gmra.mrb[0].mxu1 %v615_v20 }
  0x23   :  { %573 = vmatprep.mubr.bf16.mxu0 %v616_v23  ;;  %581 = vmatprep.mubr.bf16.mxu1 %v617_v24 }
  0x24   :  { %426 = vperm.xlu1 %603, %v348_v31   ;;  %421 = vperm.xlu0 %602, %v347_v32  }
  0x2a   :  { %574 = vmatmul.mubr.bf16.gmra.mrb[4].mxu0 %v618_v27  ;;  %582 = vmatmul.mubr.bf16.gmra.mrb[4].mxu1 %v619_v28  ;;  %v451_v27 = vld [vmem:[%s885_s2 + $0x30] sm:$0xff] }
  0x85   :  { %v362_v33 = vpop.permute.xlu1 %361  ;;  %v352_v34 = vpop.permute.xlu0 %351 }
  0x89   :  { %v367_v35 = vpop.permute.xlu1 %366  ;;  %v357_v36 = vpop.permute.xlu0 %356 }
  0x8d   :  { %v747_v37 = vpop.permute.xlu1 %376  ;;  %v749_v38 = vpop.permute.xlu0 %371 }
  0x91   :  { %v751_v39 = vpop.permute.xlu1 %386  ;;  %v753_v40 = vpop.permute.xlu0 %381 }
  0x95   :  { %v397_v41 = vpop.permute.xlu1 %396  ;;  %v392_v42 = vpop.permute.xlu0 %391 }
  0x99   :  { %v407_v43 = vpop.permute.xlu1 %406  ;;  %v402_v44 = vpop.permute.xlu0 %401 }
  0x9d   :  { %v755_v45 = vpop.permute.xlu1 %416  ;;  %v757_v46 = vpop.permute.xlu0 %411 }
  0xa3   :  { %v427_v20 = vpop.permute.xlu1 %426  ;;  %v422_v21 = vpop.permute.xlu0 %421 }
  0xf5   :  { %v571_v47 = vpop.f32.mrb[0].mxu0  ;;  %v579_v49 = vpop.f32.mrb[0].mxu1 }
  0xf6   :  { %v431_v51 = vmul.f32 %v571_v47, %v362_v33  ;;  %v439_v52 = vmul.f32 %v579_v49, %v402_v44  ;;  %v219_v53 = vpop.f32.mrb[1].mxu0  ;;  %v251_v55 = vpop.f32.mrb[1].mxu1  ;;  %v449_v33 = vld [vmem:[%s885_s2 + $0x20] sm:$0xff]  ;;  %v460_v44 = vld [vmem:[%s885_s2 + $0x78] sm:$0xff] }
  0xf7   :  { %v429_v58 = vmul.f32 %v352_v34, %v219_v53  ;;  %v437_v59 = vmul.f32 %v392_v42, %v251_v55  ;;  %v572_v60 = vpop.f32.mrb[2].mxu0  ;;  %v580_v62 = vpop.f32.mrb[2].mxu1  ;;  %v452_v42 = vld [vmem:[%s885_s2 + $0x38] sm:$0xff] }
  0xf8   :  { %v463_v0 = vadd.f32 %v447_v48, %v431_v51  ;;  %v471_v1 = vadd.f32 %v455_v50, %v439_v52  ;;  %v432_v2 = vmul.f32 %v572_v60, %v367_v35  ;;  %v440_v3 = vmul.f32 %v580_v62, %v407_v43  ;;  %v222_v4 = vpop.f32.mrb[3].mxu0  ;;  %v254_v6 = vpop.f32.mrb[3].mxu1  ;;  %v457_v35 = vld [vmem:[%s885_s2 + $0x60] sm:$0xff]  ;;  %v458_v52 = vld [vmem:[%s885_s2 + $0x68] sm:$0xff] }
  0xf9   :  { %v461_v8 = vadd.f32 %v445_v54, %v429_v58  ;;  %v469_v9 = vadd.f32 %v453_v56, %v437_v59  ;;  %v430_v10 = vmul.f32 %v357_v36, %v222_v4  ;;  %v438_v11 = vmul.f32 %v397_v41, %v254_v6 }
  0xfa   :  { %v486_v12 = vadd.f32 %v774_v57, %v463_v0  ;;  %v494_v13 = vadd.f32 %v774_v57, %v471_v1  ;;  %v464_v14 = vadd.f32 %v448_v61, %v432_v2  ;;  %v472_v15 = vadd.f32 %v456_v63, %v440_v3 }
  0xfb   :  { %v484_v16 = vadd.f32 %v774_v57, %v461_v8  ;;  %v492_v17 = vadd.f32 %v774_v57, %v469_v9  ;;  %v462_v18 = vadd.f32 %v446_v5, %v430_v10  ;;  %v470_v19 = vadd.f32 %v454_v7, %v438_v11 }
  0xfc   :  { %502 = vst [vmem:[%s887_s5 + $0x10] sm:$0xff] %v486_v12  ;;  %510 = vst [vmem:[%s887_s5 + $0x50] sm:$0xff] %v494_v13  ;;  %v487_v22 = vadd.f32 %v774_v57, %v464_v14  ;;  %v495_v23 = vadd.f32 %v774_v57, %v472_v15 }
  0xfd   :  { %500 = vst [vmem:[%s887_s5] sm:$0xff] %v484_v16  ;;  %508 = vst [vmem:[%s887_s5 + $0x40] sm:$0xff] %v492_v17  ;;  %v485_v24 = vadd.f32 %v774_v57, %v462_v18  ;;  %v493_v25 = vadd.f32 %v774_v57, %v470_v19  ;;  %v575_v26 = vpop.f32.mrb[4].mxu0  ;;  %v583_v28 = vpop.f32.mrb[4].mxu1 }
  0xfe   :  { %503 = vst [vmem:[%s887_s5 + $0x18] sm:$0xff] %v487_v22  ;;  %511 = vst [vmem:[%s887_s5 + $0x58] sm:$0xff] %v495_v23  ;;  %v435_v30 = vmul.f32 %v575_v26, %v753_v40  ;;  %v443_v31 = vmul.f32 %v583_v28, %v422_v21  ;;  %v235_v32 = vpop.f32.mrb[5].mxu0  ;;  %v267_v34 = vpop.f32.mrb[5].mxu1 }
  0xff   :  { %501 = vst [vmem:[%s887_s5 + $0x8] sm:$0xff] %v485_v24  ;;  %509 = vst [vmem:[%s887_s5 + $0x48] sm:$0xff] %v493_v25  ;;  %v433_v36 = vmul.f32 %v749_v38, %v235_v32  ;;  %v441_v40 = vmul.f32 %v757_v46, %v267_v34  ;;  %v576_v41 = vpop.f32.mrb[6].mxu0  ;;  %v584_v43 = vpop.f32.mrb[6].mxu1  ;;  %v450_v38 = vld [vmem:[%s885_s2 + $0x28] sm:$0xff] }
 0x100   :  { %v467_v47 = vadd.f32 %v451_v27, %v435_v30  ;;  %v475_v48 = vadd.f32 %v459_v29, %v443_v31  ;;  %v436_v49 = vmul.f32 %v576_v41, %v751_v39  ;;  %v444_v50 = vmul.f32 %v584_v43, %v427_v20  ;;  %v238_v51 = vpop.f32.mrb[7].mxu0  ;;  %v270_v46 = vpop.f32.mrb[7].mxu1 }
 0x101   :  { %v465_v53 = vadd.f32 %v449_v33, %v433_v36  ;;  %v473_v54 = vadd.f32 %v457_v35, %v441_v40  ;;  %v434_v55 = vmul.f32 %v747_v37, %v238_v51  ;;  %v442_v56 = vmul.f32 %v755_v45, %v270_v46 }
 0x102   :  { %v490_v58 = vadd.f32 %v774_v57, %v467_v47  ;;  %v498_v39 = vadd.f32 %v774_v57, %v475_v48  ;;  %v468_v59 = vadd.f32 %v452_v42, %v436_v49  ;;  %v476_v60 = vadd.f32 %v460_v44, %v444_v50 }
 0x103   :  { %v488_v61 = vadd.f32 %v774_v57, %v465_v53  ;;  %v496_v62 = vadd.f32 %v774_v57, %v473_v54  ;;  %v466_v63 = vadd.f32 %v450_v38, %v434_v55  ;;  %v474_v0 = vadd.f32 %v458_v52, %v442_v56 }
 0x104   :  { %506 = vst [vmem:[%s887_s5 + $0x30] sm:$0xff] %v490_v58  ;;  %514 = vst [vmem:[%s887_s5 + $0x70] sm:$0xff] %v498_v39  ;;  %v491_v37 = vadd.f32 %v774_v57, %v468_v59  ;;  %v499_v45 = vadd.f32 %v774_v57, %v476_v60 }
 0x105   :  { %504 = vst [vmem:[%s887_s5 + $0x20] sm:$0xff] %v488_v61  ;;  %512 = vst [vmem:[%s887_s5 + $0x60] sm:$0xff] %v496_v62  ;;  %v489_v1 = vadd.f32 %v774_v57, %v466_v63  ;;  %v497_v2 = vadd.f32 %v774_v57, %v474_v0 }
 0x106   :  { %507 = vst [vmem:[%s887_s5 + $0x38] sm:$0xff] %v491_v37  ;;  %515 = vst [vmem:[%s887_s5 + $0x78] sm:$0xff] %v499_v45 }
 0x107   :  { %505 = vst [vmem:[%s887_s5 + $0x28] sm:$0xff] %v489_v1  ;;  %513 = vst [vmem:[%s887_s5 + $0x68] sm:$0xff] %v497_v2 }

// kernel: gnn_forward.16
= control target key start
LH: loop header
LB: loop body
LE: loop exit
PB: predicated region body
PF: predicated region fallthrough
CT: control target
= control target key end

     0   :  { %v572_v1 = vmov 0   ;;  %v54_v20 = vlaneseq  ;;  %s811_s4 = inlined_call_operand.vmem [shape: bf16[128,256], index: 4, kind: input, shape index: {}]   ;;  %s812_s1 = inlined_call_operand.vmem [shape: f32[1,256], index: 1, kind: input, shape index: {}]   ;;  %s813_s2 = inlined_call_operand.vmem [shape: f32[1,128], index: 2, kind: input, shape index: {}]   ;;  %s814_s0 = inlined_call_operand.vmem [shape: f32[128,128], index: 0, kind: input, shape index: {}]   ;;  %s815_s3 = inlined_call_operand.vmem [shape: f32[1,128], index: 3, kind: input, shape index: {}]   ;;  %s816_s6 = inlined_call_operand.vmem [shape: f32[128,128], index: 6, kind: output, shape index: {1}]   ;;  %s817_s5 = inlined_call_operand.vmem [shape: bf16[128,128], index: 5, kind: output, shape index: {0}]  }
   0x1   :  { %v546_v0 = vld [vmem:[%s811_s4 + $0x4] ss:$8 sps:$4 sm:$0xff]   ;;  %249 = vmatprep.mubr.bf16.mxu0 %v572_v1  ;;  %289 = vmatprep.mubr.bf16.mxu1 %v572_v1  ;;  %v548_v2 = vld [vmem:[%s811_s4] ss:$8 sps:$4 sm:$0xff]   ;;  %v549_v3 = vld [vmem:[%s811_s4 + $0x14] ss:$8 sps:$4 sm:$0xff]  }
   0x2   :  { %217 = vmatprep.subr.bf16.mxu0 %v546_v0  ;;  %529 = vmatprep.subr.bf16.mxu1 %v546_v0  ;;  %v551_v4 = vld [vmem:[%s811_s4 + $0x10] ss:$8 sps:$4 sm:$0xff]   ;;  %v552_v5 = vld [vmem:[%s811_s4 + $0x24] ss:$8 sps:$4 sm:$0xff]   ;;  %v554_v6 = vld [vmem:[%s811_s4 + $0x20] ss:$8 sps:$4 sm:$0xff]  }
   0x3   :  { %218 = vmatpush1.bf16.msra.mxu0 %v548_v2  ;;  %537 = vmatpush1.bf16.msra.mxu1 %v548_v2  ;;  %v555_v7 = vld [vmem:[%s811_s4 + $0x34] ss:$8 sps:$4 sm:$0xff]   ;;  %v23_v8 = vld [vmem:[%s812_s1] sm:$0x3]  ;;  %v557_v9 = vld [vmem:[%s811_s4 + $0x30] ss:$8 sps:$4 sm:$0xff]  }
   0x4   :  { %219 = vmatprep.subr.bf16.mxu0 %v549_v3  ;;  %530 = vmatprep.subr.bf16.mxu1 %v549_v3  ;;  %v24_v10 = vmul.f32 %v23_v8, %v23_v8  ;;  %v26_v11 = vrot.slane %v23_v8, 1  ;;  %v558_v12 = vld [vmem:[%s811_s4 + $0x44] ss:$8 sps:$4 sm:$0xff]   ;;  %v560_v14 = vld [vmem:[%s811_s4 + $0x40] ss:$8 sps:$4 sm:$0xff]   ;;  %v55_v23 = vshrl.u32 %v54_v20, 7 }
   0x5   :  { %v561_v16 = vld [vmem:[%s811_s4 + $0x54] ss:$8 sps:$4 sm:$0xff]   ;;  %v563_v18 = vld [vmem:[%s811_s4 + $0x50] ss:$8 sps:$4 sm:$0xff]   ;;  %v564_v19 = vld [vmem:[%s811_s4 + $0x64] ss:$8 sps:$4 sm:$0xff]  }
   0x6   :  { %v28_v13 = vsub.f32 %v26_v11, %v24_v10  ;;  %v566_v21 = vld [vmem:[%s811_s4 + $0x60] ss:$8 sps:$4 sm:$0xff]   ;;  %v567_v22 = vld [vmem:[%s811_s4 + $0x74] ss:$8 sps:$4 sm:$0xff]   ;;  %v569_v24 = vld [vmem:[%s811_s4 + $0x70] ss:$8 sps:$4 sm:$0xff]  }
   0x7   :  { %220 = vmatpush1.bf16.msra.mxu0 %v551_v4  ;;  %538 = vmatpush1.bf16.msra.mxu1 %v551_v4  ;;  %v30_v25 = vld [vmem:[%s813_s2] sm:$0x1]  ;;  %v56_v26 = vsub.s32 0, %v55_v23  ;;  %v38_v31 = vld [vmem:[%s814_s0 + $0x8] sm:$0xff]  ;;  %v39_v36 = vld [vmem:[%s814_s0 + $0x10] sm:$0xff] }
   0x8   :  { %221 = vmatprep.subr.bf16.mxu0 %v552_v5  ;;  %531 = vmatprep.subr.bf16.mxu1 %v552_v5  ;;  %v29_v15 = vmax.f32 %v28_v13, 0.0  ;;  %v34_v29 = vld [vmem:[%s815_s3] sm:$0x1]  ;;  %v46_v33 = vld [vmem:[%s814_s0 + $0x48] sm:$0xff]  ;;  %v40_v37 = vld [vmem:[%s814_s0 + $0x18] sm:$0xff] }
   0x9   :  { %v37_v30 = vld [vmem:[%s814_s0] sm:$0xff]  ;;  %v47_v38 = vld [vmem:[%s814_s0 + $0x50] sm:$0xff]  ;;  %v48_v39 = vld [vmem:[%s814_s0 + $0x58] sm:$0xff] }
   0xa   :  { %v31_v17 = vadd.f32 1e-05, %v29_v15  ;;  %v45_v32 = vld [vmem:[%s814_s0 + $0x40] sm:$0xff]  ;;  %v42_v59 = vld [vmem:[%s814_s0 + $0x28] sm:$0xff]  ;;  %v44_v20 = vld [vmem:[%s814_s0 + $0x38] sm:$0xff] }
   0xb   :  { %222 = vmatpush1.bf16.msra.mxu0 %v554_v6  ;;  %539 = vmatpush1.bf16.msra.mxu1 %v554_v6  ;;  %v41_v58 = vld [vmem:[%s814_s0 + $0x20] sm:$0xff]  ;;  %v50_v2 = vld [vmem:[%s814_s0 + $0x68] sm:$0xff] }
   0xc   :  { %223 = vmatprep.subr.bf16.mxu0 %v555_v7  ;;  %532 = vmatprep.subr.bf16.mxu1 %v555_v7  ;;  %570 = vrsqrt.f32 %v31_v17  ;;  %v49_v0 = vld [vmem:[%s814_s0 + $0x60] sm:$0xff] }
   0xf   :  { %224 = vmatpush1.bf16.msra.mxu0 %v557_v9  ;;  %540 = vmatpush1.bf16.msra.mxu1 %v557_v9 }
  0x10   :  { %225 = vmatprep.subr.bf16.mxu0 %v558_v12  ;;  %533 = vmatprep.subr.bf16.mxu1 %v558_v12 }
  0x13   :  { %226 = vmatpush1.bf16.msra.mxu0 %v560_v14  ;;  %541 = vmatpush1.bf16.msra.mxu1 %v560_v14 }
  0x14   :  { %227 = vmatprep.subr.bf16.mxu0 %v561_v16  ;;  %534 = vmatprep.subr.bf16.mxu1 %v561_v16 }
  0x16   :  { %v571_v27 = vpop.eup %570 }
  0x17   :  { %228 = vmatpush1.bf16.msra.mxu0 %v563_v18  ;;  %542 = vmatpush1.bf16.msra.mxu1 %v563_v18  ;;  %v33_v28 = vmul.f32 %v571_v27, %v30_v25 }
  0x18   :  { %229 = vmatprep.subr.bf16.mxu0 %v564_v19  ;;  %535 = vmatprep.subr.bf16.mxu1 %v564_v19  ;;  %v43_v19 = vld [vmem:[%s814_s0 + $0x30] sm:$0xff] }
  0x19   :  { %v35_v34 = vmul.f32 %v33_v28, %v23_v8  ;;  %v679_v35 = vrot.slane %v33_v28, %v56_v26 }
  0x1b   :  { %230 = vmatpush1.bf16.msra.mxu0 %v566_v21  ;;  %543 = vmatpush1.bf16.msra.mxu1 %v566_v21  ;;  %v36_v40 = vsub.f32 %v34_v29, %v35_v34  ;;  %v59_v41 = vmul.f32 %v679_v35, %v37_v30  ;;  %v60_v42 = vmul.f32 %v679_v35, %v38_v31  ;;  %v51_v21 = vld [vmem:[%s814_s0 + $0x70] sm:$0xff] }
  0x1c   :  { %231 = vmatprep.subr.bf16.mxu0 %v567_v22  ;;  %536 = vmatprep.subr.bf16.mxu1 %v567_v22  ;;  %v67_v43 = vmul.f32 %v679_v35, %v45_v32  ;;  %v68_v44 = vmul.f32 %v679_v35, %v46_v33  ;;  %v61_v45 = vmul.f32 %v679_v35, %v39_v36  ;;  %v52_v22 = vld [vmem:[%s814_s0 + $0x78] sm:$0xff] }
  0x1d   :  { %v62_v46 = vmul.f32 %v679_v35, %v40_v37  ;;  %v69_v47 = vmul.f32 %v679_v35, %v47_v38  ;;  %v79_v48 = vrot.slane %v36_v40, %v56_v26  ;;  %v70_v49 = vmul.f32 %v679_v35, %v48_v39 }
  0x1e   :  { %v63_v5 = vmul.f32 %v679_v35, %v41_v58  ;;  %v64_v6 = vmul.f32 %v679_v35, %v42_v59  ;;  %v71_v7 = vmul.f32 %v679_v35, %v49_v0  ;;  %v72_v8 = vmul.f32 %v679_v35, %v50_v2 }
  0x1f   :  { %232 = vmatpush1.bf16.msra.mxu0 %v569_v24  ;;  %544 = vmatpush1.bf16.msra.mxu1 %v569_v24  ;;  %v81_v50 = vadd.f32 %v79_v48, %v59_v41  ;;  %v82_v51 = vadd.f32 %v79_v48, %v60_v42  ;;  %v89_v52 = vadd.f32 %v79_v48, %v67_v43 }
  0x20   :  { %v90_v53 = vadd.f32 %v79_v48, %v68_v44  ;;  %v83_v54 = vadd.f32 %v79_v48, %v61_v45  ;;  %v84_v55 = vadd.f32 %v79_v48, %v62_v46  ;;  %v91_v56 = vadd.f32 %v79_v48, %v69_v47 }
  0x21   :  { %v92_v57 = vadd.f32 %v79_v48, %v70_v49  ;;  %v97_v60 = vmax.f32 %v81_v50, 0.0  ;;  %v98_v61 = vmax.f32 %v82_v51, 0.0  ;;  %v105_v62 = vmax.f32 %v89_v52, 0.0 }
  0x22   :  { %v106_v63 = vmax.f32 %v90_v53, 0.0  ;;  %v99_v9 = vmax.f32 %v83_v54, 0.0  ;;  %v100_v10 = vmax.f32 %v84_v55, 0.0  ;;  %v107_v11 = vmax.f32 %v91_v56, 0.0 }
  0x23   :  { %v113_v3 = vpack.c.bf16 %v98_v61, %v97_v60  ;;  %v108_v12 = vmax.f32 %v92_v57, 0.0  ;;  %v85_v13 = vadd.f32 %v79_v48, %v63_v5  ;;  %v86_v14 = vadd.f32 %v79_v48, %v64_v6 }
  0x24   :  { %v117_v4 = vpack.c.bf16 %v106_v63, %v105_v62  ;;  %v114_v15 = vpack.c.bf16 %v100_v10, %v99_v9  ;;  %v93_v17 = vadd.f32 %v79_v48, %v71_v7  ;;  %v94_v18 = vadd.f32 %v79_v48, %v72_v8 }
  0x25   :  { %250 = vmatmul.mubr.bf16.vlgmr.msra.gmra.mrb[0].mxu0 %v113_v3  ;;  %v118_v16 = vpack.c.bf16 %v108_v12, %v107_v11  ;;  %v101_v23 = vmax.f32 %v85_v13, 0.0  ;;  %v102_v24 = vmax.f32 %v86_v14, 0.0  ;;  %v65_v25 = vmul.f32 %v679_v35, %v43_v19 }
  0x26   :  { %290 = vmatmul.mubr.bf16.vlgmr.msra.gmra.mrb[0].mxu1 %v117_v4  ;;  %259 = vmatprep.mubr.bf16.mxu0 %v572_v1  ;;  %v66_v26 = vmul.f32 %v679_v35, %v44_v20  ;;  %v109_v27 = vmax.f32 %v93_v17, 0.0  ;;  %v110_v28 = vmax.f32 %v94_v18, 0.0  ;;  %v73_v29 = vmul.f32 %v679_v35, %v51_v21 }
  0x27   :  { %299 = vmatprep.mubr.bf16.mxu1 %v572_v1  ;;  %v74_v30 = vmul.f32 %v679_v35, %v52_v22  ;;  %v87_v31 = vadd.f32 %v79_v48, %v65_v25  ;;  %v115_v33 = vpack.c.bf16 %v102_v24, %v101_v23 }
  0x28   :  { %v88_v32 = vadd.f32 %v79_v48, %v66_v26  ;;  %v119_v34 = vpack.c.bf16 %v110_v28, %v109_v27  ;;  %v95_v36 = vadd.f32 %v79_v48, %v73_v29 }
  0x29   :  { %v96_v37 = vadd.f32 %v79_v48, %v74_v30  ;;  %v103_v38 = vmax.f32 %v87_v31, 0.0 }
  0x2a   :  { %v104_v39 = vmax.f32 %v88_v32, 0.0  ;;  %v111_v40 = vmax.f32 %v95_v36, 0.0 }
  0x2b   :  { %v112_v41 = vmax.f32 %v96_v37, 0.0 }
  0x2c   :  { %v116_v35 = vpack.c.bf16 %v104_v39, %v103_v38 }
  0x2d   :  { %260 = vmatmul.mubr.bf16.gmra.mrb[4].mxu0 %v114_v15  ;;  %v120_v42 = vpack.c.bf16 %v112_v41, %v111_v40 }
  0x2e   :  { %300 = vmatmul.mubr.bf16.gmra.mrb[4].mxu1 %v118_v16  ;;  %269 = vmatprep.mubr.bf16.mxu0 %v572_v1 }
  0x2f   :  { %309 = vmatprep.mubr.bf16.mxu1 %v572_v1 }
  0x35   :  { %270 = vmatmul.mubr.bf16.gmra.mrb[8].mxu0 %v115_v33 }
  0x36   :  { %310 = vmatmul.mubr.bf16.gmra.mrb[8].mxu1 %v119_v34  ;;  %279 = vmatprep.mubr.bf16.mxu0 %v572_v1 }
  0x37   :  { %319 = vmatprep.mubr.bf16.mxu1 %v572_v1 }
  0x3d   :  { %280 = vmatmul.mubr.bf16.gmra.mrb[12].mxu0 %v116_v35 }
  0x3e   :  { %320 = vmatmul.mubr.bf16.gmra.mrb[12].mxu1 %v120_v42 }
  0xf8   :  { %v251_v43 = vpop.f32.mrb[0].mxu0 }
  0xf9   :  { %v291_v44 = vpop.f32.mrb[0].mxu1  ;;  %v253_v45 = vpop.f32.mrb[1].mxu0 }
  0xfa   :  { %v293_v46 = vpop.f32.mrb[1].mxu1  ;;  %410 = vst [vmem:[%s816_s6] sm:$0xff] %v253_v45  ;;  %v255_v47 = vpop.f32.mrb[2].mxu0 }
  0xfb   :  { %418 = vst [vmem:[%s816_s6 + $0x40] sm:$0xff] %v293_v46  ;;  %v295_v48 = vpop.f32.mrb[2].mxu1  ;;  %v485_v49 = vpack.c.bf16 %v255_v47, %v251_v43  ;;  %v257_v50 = vpop.f32.mrb[3].mxu0 }
  0xfc   :  { %v505_v1 = vpack.c.bf16 %v295_v48, %v291_v44  ;;  %v297_v51 = vpop.f32.mrb[3].mxu1  ;;  %411 = vst [vmem:[%s816_s6 + $0x8] sm:$0xff] %v257_v50 }
  0xfd   :  { %419 = vst [vmem:[%s816_s6 + $0x48] sm:$0xff] %v297_v51  ;;  %486 = vst [vmem:[%s817_s5] sm:$0xff] %v485_v49  }
  0xfe   :  { %525 = vst [vmem:[%s817_s5 + $0x20] sm:$0xff] %v505_v1  }
 0x100   :  { %v261_v52 = vpop.f32.mrb[4].mxu0 }
 0x101   :  { %v301_v53 = vpop.f32.mrb[4].mxu1  ;;  %v263_v54 = vpop.f32.mrb[5].mxu0 }
 0x102   :  { %v303_v55 = vpop.f32.mrb[5].mxu1  ;;  %412 = vst [vmem:[%s816_s6 + $0x10] sm:$0xff] %v263_v54  ;;  %v265_v56 = vpop.f32.mrb[6].mxu0 }
 0x103   :  { %420 = vst [vmem:[%s816_s6 + $0x50] sm:$0xff] %v303_v55  ;;  %v305_v57 = vpop.f32.mrb[6].mxu1  ;;  %v490_v58 = vpack.c.bf16 %v265_v56, %v261_v52  ;;  %v267_v60 = vpop.f32.mrb[7].mxu0 }
 0x104   :  { %v510_v59 = vpack.c.bf16 %v305_v57, %v301_v53  ;;  %v307_v61 = vpop.f32.mrb[7].mxu1  ;;  %413 = vst [vmem:[%s816_s6 + $0x18] sm:$0xff] %v267_v60 }
 0x105   :  { %421 = vst [vmem:[%s816_s6 + $0x58] sm:$0xff] %v307_v61  ;;  %522 = vst [vmem:[%s817_s5 + $0x8] sm:$0xff] %v490_v58  }
 0x106   :  { %526 = vst [vmem:[%s817_s5 + $0x28] sm:$0xff] %v510_v59  }
 0x108   :  { %v271_v62 = vpop.f32.mrb[8].mxu0 }
 0x109   :  { %v311_v63 = vpop.f32.mrb[8].mxu1  ;;  %v273_v0 = vpop.f32.mrb[9].mxu0 }
 0x10a   :  { %v313_v2 = vpop.f32.mrb[9].mxu1  ;;  %414 = vst [vmem:[%s816_s6 + $0x20] sm:$0xff] %v273_v0  ;;  %v275_v3 = vpop.f32.mrb[10].mxu0 }
 0x10b   :  { %422 = vst [vmem:[%s816_s6 + $0x60] sm:$0xff] %v313_v2  ;;  %v315_v4 = vpop.f32.mrb[10].mxu1  ;;  %v495_v5 = vpack.c.bf16 %v275_v3, %v271_v62  ;;  %v277_v7 = vpop.f32.mrb[11].mxu0 }
 0x10c   :  { %v515_v6 = vpack.c.bf16 %v315_v4, %v311_v63  ;;  %v317_v8 = vpop.f32.mrb[11].mxu1  ;;  %415 = vst [vmem:[%s816_s6 + $0x28] sm:$0xff] %v277_v7 }
 0x10d   :  { %423 = vst [vmem:[%s816_s6 + $0x68] sm:$0xff] %v317_v8  ;;  %523 = vst [vmem:[%s817_s5 + $0x10] sm:$0xff] %v495_v5  }
 0x10e   :  { %527 = vst [vmem:[%s817_s5 + $0x30] sm:$0xff] %v515_v6  }
 0x110   :  { %v281_v9 = vpop.f32.mrb[12].mxu0 }
 0x111   :  { %v321_v10 = vpop.f32.mrb[12].mxu1  ;;  %v283_v11 = vpop.f32.mrb[13].mxu0 }
 0x112   :  { %v323_v12 = vpop.f32.mrb[13].mxu1  ;;  %416 = vst [vmem:[%s816_s6 + $0x30] sm:$0xff] %v283_v11  ;;  %v285_v13 = vpop.f32.mrb[14].mxu0 }
 0x113   :  { %424 = vst [vmem:[%s816_s6 + $0x70] sm:$0xff] %v323_v12  ;;  %v325_v14 = vpop.f32.mrb[14].mxu1  ;;  %v500_v15 = vpack.c.bf16 %v285_v13, %v281_v9  ;;  %v287_v17 = vpop.f32.mrb[15].mxu0 }
 0x114   :  { %v520_v16 = vpack.c.bf16 %v325_v14, %v321_v10  ;;  %v327_v18 = vpop.f32.mrb[15].mxu1  ;;  %417 = vst [vmem:[%s816_s6 + $0x38] sm:$0xff] %v287_v17 }
 0x115   :  { %425 = vst [vmem:[%s816_s6 + $0x78] sm:$0xff] %v327_v18  ;;  %524 = vst [vmem:[%s817_s5 + $0x18] sm:$0xff] %v500_v15  }
 0x116   :  { %528 = vst [vmem:[%s817_s5 + $0x38] sm:$0xff] %v520_v16  }

// kernel: gnn_forward.25
= control target key start
LH: loop header
LB: loop body
LE: loop exit
PB: predicated region body
PF: predicated region fallthrough
CT: control target
= control target key end

     0   :  { %v524_v1 = vmov 0   ;;  %v525_v3 = vmov 0.0   ;;  %vm526_vm0 = vmmov 0   ;;  %v65_v15 = vlaneseq  ;;  %s853_s0 = inlined_call_operand.vmem [shape: f32[128,128], index: 0, kind: input, shape index: {}]   ;;  %s854_s1 = inlined_call_operand.vmem [shape: f32[1,256], index: 1, kind: input, shape index: {}]   ;;  %s855_s2 = inlined_call_operand.vmem [shape: f32[1,128], index: 2, kind: input, shape index: {}]   ;;  %s856_s3 = inlined_call_operand.vmem [shape: f32[1,128], index: 3, kind: input, shape index: {}]   ;;  %s857_s4 = inlined_call_operand.vmem [shape: bf16[2,128], index: 4, kind: input, shape index: {}]   ;;  %s858_s5 = inlined_call_operand.vmem [shape: f32[2,1], index: 5, kind: input, shape index: {}]   ;;  %s859_s6 = inlined_call_operand.vmem [shape: f32[128,2], index: 6, kind: input, shape index: {}]   ;;  %s860_s7 = inlined_call_operand.hbm [shape: f32[2,256], index: 7, kind: output, shape index: {}]  }
   0x1   :  { %v178_v0 = vld [vmem:[%s859_s6 + $0x10] sm:$0xff]  ;;  %489 = vset.pattern.permute.xlu1 %v524_v1  ;;  %488 = vset.pattern.permute.xlu0 %v524_v1  ;;  %v577_v2 = vld [vmem:[%s859_s6] sm:$0xff]  ;;  %32 = vst [vmem:[#allocation2] sm:$0x3] %v525_v3  ;;  %33 = vst [vmem:[#allocation3] sm:$0x3] %v525_v3 }
   0x2   :  { %204 = vperm.xlu1 %489, %v178_v0   ;;  %194 = vperm.xlu0 %488, %v577_v2   ;;  %v34_v4 = vld [vmem:[%s854_s1] sm:$0x3]  ;;  %v588_v5 = vld [vmem:[%s859_s6 + $0x18] sm:$0xff]  ;;  %v177_v8 = vld [vmem:[%s859_s6 + $0x8] sm:$0xff] }
   0x3   :  { %463 = vmatprep.subr.bf16.mxu0 %v525_v3  ;;  %v35_v6 = vmul.f32 %v34_v4, %v34_v4  ;;  %v37_v7 = vrot.slane %v34_v4, 1  ;;  %479 = vmatprep.mubr.msk.bf16.mxu0 %vm526_vm0, %v525_v3  ;;  %v599_v10 = vld [vmem:[%s859_s6 + $0x28] sm:$0xff]  ;;  %v180_v12 = vld [vmem:[%s859_s6 + $0x20] sm:$0xff]  ;;  %v608_v14 = vld [vmem:[%s859_s6 + $0x38] sm:$0xff] }
   0x5   :  { %v39_v9 = vsub.f32 %v37_v7, %v35_v6 }
   0x6   :  { %209 = vperm.xlu1 %489, %v588_v5   ;;  %199 = vperm.xlu0 %488, %v177_v8  }
   0x7   :  { %v40_v11 = vmax.f32 %v39_v9, 0.0 }
   0x9   :  { %v42_v13 = vadd.f32 1e-05, %v40_v11 }
   0xa   :  { %219 = vperm.xlu1 %489, %v599_v10   ;;  %214 = vperm.xlu0 %488, %v180_v12  }
   0xb   :  { %498 = vrsqrt.f32 %v42_v13 }
   0xc   :  { %12 = vsyncpa [#allocation5], 0  ;;  %v182_v16 = vld [vmem:[%s859_s6 + $0x30] sm:$0xff]  ;;  %v617_v17 = vld [vmem:[%s859_s6 + $0x48] sm:$0xff]  ;;  %v66_v18 = vshrl.u32 %v65_v15, 7  ;;  %v527_v19 = vmov 1  }
   0xd   :  { %v41_v20 = vld [vmem:[%s855_s2] sm:$0x1]  ;;  %v627_v21 = vld [vmem:[%s859_s6 + $0x68] sm:$0xff]  ;;  %v50_v28 = vld [vmem:[%s853_s0 + $0x10] sm:$0xff]  ;;  %vm410_vm1 = vcmask 1040384  }
   0xe   :  { %229 = vperm.xlu1 %489, %v608_v14   ;;  %224 = vperm.xlu0 %488, %v182_v16   ;;  %v67_v22 = vsub.s32 0, %v66_v18  ;;  %v45_v25 = vld [vmem:[%s856_s3] sm:$0x1]  ;;  %v49_v27 = vld [vmem:[%s853_s0 + $0x8] sm:$0xff]  ;;  %v51_v31 = vld [vmem:[%s853_s0 + $0x18] sm:$0xff] }
   0xf   :  { %v48_v26 = vld [vmem:[%s853_s0] sm:$0xff]  ;;  %v53_v33 = vld [vmem:[%s853_s0 + $0x28] sm:$0xff]  ;;  %v54_v42 = vld [vmem:[%s853_s0 + $0x30] sm:$0xff] }
  0x10   :  { %v52_v32 = vld [vmem:[%s853_s0 + $0x20] sm:$0xff]  ;;  %v55_v43 = vld [vmem:[%s853_s0 + $0x38] sm:$0xff]  ;;  %v57_v57 = vld [vmem:[%s853_s0 + $0x48] sm:$0xff] }
  0x11   :  { %v56_v56 = vld [vmem:[%s853_s0 + $0x40] sm:$0xff]  ;;  %v59_v6 = vld [vmem:[%s853_s0 + $0x58] sm:$0xff]  ;;  %v186_v7 = vld [vmem:[%s859_s6 + $0x50] sm:$0xff] }
  0x12   :  { %490 = vset.pattern.permute.xlu1 %v527_v19  ;;  %239 = vperm.xlu0 %488, %v617_v17   ;;  %v184_v58 = vld [vmem:[%s859_s6 + $0x40] sm:$0xff]  ;;  %v61_v18 = vld [vmem:[%s853_s0 + $0x68] sm:$0xff] }
  0x13   :  { %314 = vperm.xlu1 %490, %v177_v8  }
  0x15   :  { %v499_v23 = vpop.eup %498 }
  0x16   :  { %v44_v24 = vmul.f32 %v499_v23, %v41_v20  ;;  %259 = vperm.xlu0 %488, %v627_v21   ;;  %v187_v20 = vld [vmem:[%s859_s6 + $0x58] sm:$0xff] }
  0x17   :  { %318 = vperm.xlu1 %490, %v178_v0  }
  0x18   :  { %v46_v29 = vmul.f32 %v44_v24, %v34_v4  ;;  %v642_v30 = vrot.slane %v44_v24, %v67_v22 }
  0x1a   :  { %v47_v34 = vsub.f32 %v45_v25, %v46_v29  ;;  %v70_v35 = vmul.f32 %v642_v30, %v48_v26  ;;  %v71_v36 = vmul.f32 %v642_v30, %v49_v27  ;;  %v72_v37 = vmul.f32 %v642_v30, %v50_v28  ;;  %494 = vset.pattern.permute.xlu0 %v527_v19  ;;  %v63_v29 = vld [vmem:[%s853_s0 + $0x78] sm:$0xff] }
  0x1b   :  { %326 = vperm.xlu1 %490, %v180_v12   ;;  %v73_v38 = vmul.f32 %v642_v30, %v51_v31  ;;  %v74_v39 = vmul.f32 %v642_v30, %v52_v32  ;;  %v75_v40 = vmul.f32 %v642_v30, %v53_v33  ;;  %310 = vperm.xlu0 %494, %v577_v2  }
  0x1c   :  { %v660_v41 = vrot.slane %v47_v34, %v67_v22  ;;  %v76_v50 = vmul.f32 %v642_v30, %v54_v42  ;;  %v77_v51 = vmul.f32 %v642_v30, %v55_v43  ;;  %v78_v61 = vmul.f32 %v642_v30, %v56_v56 }
  0x1d   :  { %v79_v62 = vmul.f32 %v642_v30, %v57_v57  ;;  %v81_v11 = vmul.f32 %v642_v30, %v59_v6  ;;  %v83_v24 = vmul.f32 %v642_v30, %v61_v18 }
  0x1e   :  { %v92_v44 = vadd.f32 %v660_v41, %v70_v35  ;;  %v93_v45 = vadd.f32 %v660_v41, %v71_v36  ;;  %v94_v46 = vadd.f32 %v660_v41, %v72_v37  ;;  %v95_v47 = vadd.f32 %v660_v41, %v73_v38 }
  0x1f   :  { %334 = vperm.xlu1 %490, %v182_v16   ;;  %v96_v48 = vadd.f32 %v660_v41, %v74_v39  ;;  %v97_v49 = vadd.f32 %v660_v41, %v75_v40  ;;  %322 = vperm.xlu0 %494, %v588_v5   ;;  %v98_v60 = vadd.f32 %v660_v41, %v76_v50  ;;  %v58_v5 = vld [vmem:[%s853_s0 + $0x50] sm:$0xff] }
  0x20   :  { %v677_v52 = vmax.f32 %v92_v44, 0.0  ;;  %v679_v53 = vmax.f32 %v93_v45, 0.0  ;;  %v681_v54 = vmax.f32 %v94_v46, 0.0  ;;  %v683_v55 = vmax.f32 %v95_v47, 0.0  ;;  %v190_v46 = vld [vmem:[%s859_s6 + $0x70] sm:$0xff] }
  0x21   :  { %v703_v0 = vmax.f32 %v96_v48, 0.0  ;;  %v705_v2 = vmax.f32 %v97_v49, 0.0  ;;  %v99_v4 = vadd.f32 %v660_v41, %v77_v51  ;;  %v719_v8 = vmax.f32 %v98_v60, 0.0  ;;  %v125_v48 = vld [vmem:[%s857_s4] sm:$0x1]  ;;  %s528_s4 = smov [#allocation4]  }
  0x22   :  { %v126_v59 = vpack.c.bf16 %v679_v53, %v677_v52  ;;  %v127_v63 = vpack.c.bf16 %v683_v55, %v681_v54  ;;  %v80_v9 = vmul.f32 %v642_v30, %v58_v5  ;;  %v100_v15 = vadd.f32 %v660_v41, %v78_v61  ;;  %v419_v49 = vld [vmem:[%s858_s5] sm:$0x3]  ;;  %s445_s5 = sshll.u32 %s528_s4, 4  ;;  %s446_s5 = int_to_ptr.vmem [resolvable:$true] %s445_s5 }
  0x23   :  { %491 = vset.pattern.permute.xlu1 %v524_v1  ;;  %330 = vperm.xlu0 %494, %v599_v10   ;;  %v128_v12 = vpack.c.bf16 %v705_v2, %v703_v0  ;;  %v725_v13 = vmax.f32 %v99_v4, 0.0  ;;  %v101_v16 = vadd.f32 %v660_v41, %v79_v62  ;;  %v60_v10 = vld [vmem:[%s853_s0 + $0x60] sm:$0xff]  ;;  %v103_v28 = vadd.f32 %v660_v41, %v81_v11  ;;  %s500_s20 = scalar_lea.vmem %s446_s5, 64  ;;  %p505_p1 = scmp.lt.s32.totalorder %s446_s5, %s446_s5 }
  0x24   :  { %464 = vmatpush3.bf16.msra.mxu0 %v126_v59  ;;  %234 = vperm.xlu1 %491, %v184_v58   ;;  %v102_v22 = vadd.f32 %v660_v41, %v80_v9  ;;  %v82_v23 = vmul.f32 %v642_v30, %v60_v10  ;;  %v745_v26 = vmax.f32 %v100_v15, 0.0  ;;  %v105_v33 = vadd.f32 %v660_v41, %v83_v24  ;;  %p501_p0 = scmp.ne.s32.totalorder %s446_s5, %s500_s20  ;;  %p506_p2 = scmp.lt.s32.totalorder %s500_s20, %s500_s20 }
  0x25   :  { %465 = vmatprep.subr.bf16.mxu0 %v525_v3  ;;  %v129_v25 = vpack.c.bf16 %v725_v13, %v719_v8  ;;  %v747_v27 = vmax.f32 %v101_v16, 0.0  ;;  %v764_v35 = vmax.f32 %v103_v28, 0.0  ;;  %v85_v37 = vmul.f32 %v642_v30, %v63_v29 }
  0x26   :  { %v757_v31 = vmax.f32 %v102_v22, 0.0  ;;  %v104_v32 = vadd.f32 %v660_v41, %v82_v23  ;;  %v774_v40 = vmax.f32 %v105_v33, 0.0  ;;  %p507_p3 = por %p506_p2, %p505_p1 }
  0x27   :  { %338 = vperm.xlu0 %494, %v608_v14   ;;  %v62_v14 = vld [vmem:[%s853_s0 + $0x70] sm:$0xff]  ;;  %v130_v34 = vpack.c.bf16 %v747_v27, %v745_v26  ;;  %v107_v43 = vadd.f32 %v660_v41, %v85_v37 }
  0x28   :  { %466 = vmatpush3.bf16.msra.mxu0 %v127_v63  ;;  %244 = vperm.xlu1 %491, %v186_v7   ;;  %v84_v36 = vmul.f32 %v642_v30, %v62_v14  ;;  %v770_v38 = vmax.f32 %v104_v32, 0.0  ;;  %v131_v39 = vpack.c.bf16 %v764_v35, %v757_v31  ;;  %p508_p4 = pnand %p507_p3, %p501_p0 }
  0x29   :  { %467 = vmatprep.subr.bf16.mxu0 %v525_v3  ;;  %v786_v45 = vmax.f32 %v107_v43, 0.0 }
  0x2a   :  { %v106_v42 = vadd.f32 %v660_v41, %v84_v36  ;;  %v132_v30 = vpack.c.bf16 %v774_v40, %v770_v38  ;;  %v191_v41 = vld [vmem:[%s859_s6 + $0x78] sm:$0xff] }
  0x2b   :  { %342 = vperm.xlu0 %494, %v184_v58  }
  0x2c   :  { %468 = vmatpush3.bf16.msra.mxu0 %v128_v12  ;;  %249 = vperm.xlu1 %491, %v187_v20   ;;  %v784_v44 = vmax.f32 %v106_v42, 0.0 }
  0x2d   :  { %469 = vmatprep.subr.bf16.mxu0 %v525_v3 }
  0x2e   :  { %v133_v47 = vpack.c.bf16 %v786_v45, %v784_v44 }
  0x2f   :  { %354 = vperm.xlu0 %494, %v187_v20  }
  0x30   :  { %470 = vmatpush3.bf16.msra.mxu0 %v129_v25  ;;  %492 = vset.pattern.permute.xlu1 %v527_v19 }
  0x31   :  { %346 = vperm.xlu1 %492, %v617_v17   ;;  %471 = vmatprep.subr.bf16.mxu0 %v525_v3  ;;  %v188_v17 = vld [vmem:[%s859_s6 + $0x60] sm:$0xff] }
  0x33   :  { %358 = vperm.xlu0 %494, %v188_v17  }
  0x34   :  { %472 = vmatpush3.bf16.msra.mxu0 %v130_v34 }
  0x35   :  { %350 = vperm.xlu1 %492, %v186_v7   ;;  %473 = vmatprep.subr.bf16.mxu0 %v525_v3 }
  0x37   :  { %370 = vperm.xlu0 %494, %v191_v41  }
  0x38   :  { %474 = vmatpush3.bf16.msra.mxu0 %v131_v39 }
  0x39   :  { %493 = vset.pattern.permute.xlu1 %v524_v1  ;;  %475 = vmatprep.subr.bf16.mxu0 %v525_v3 }
  0x3a   :  { %254 = vperm.xlu1 %493, %v188_v17  }
  0x3b   :  { %497 = vset.pattern.permute.xlu0 %v524_v1 }
  0x3c   :  { %476 = vmatpush3.bf16.msra.mxu0 %v132_v30 }
  0x3d   :  { %477 = vmatprep.subr.bf16.mxu0 %v525_v3 }
  0x3e   :  { %264 = vperm.xlu1 %493, %v190_v46  }
  0x40   :  { %478 = vmatpush3.bf16.msra.mxu0 %v133_v47 }
  0x42   :  { %269 = vperm.xlu1 %493, %v191_v41  }
  0x43   :  { %480 = vmatmul.mubr.bf16.vlgmr.msra.gmra.mrb[0].mxu0 %v125_v48 }
  0x46   :  { %495 = vset.pattern.permute.xlu1 %v527_v19 }
  0x47   :  { %362 = vperm.xlu1 %495, %v627_v21  }
  0x4b   :  { %366 = vperm.xlu1 %495, %v190_v46  }
  0x4f   :  { %496 = vset.pattern.permute.xlu1 %v524_v1 }
  0x50   :  { %422 = vperm.xlu1 %496, %v419_v49  }
  0x81   :  { %v205_v3 = vpop.permute.xlu1 %204  ;;  %v195_v50 = vpop.permute.xlu0 %194 }
  0x82   :  { %v272_v22 = vmul.f32 %v195_v50, %v677_v52  ;;  %v274_v24 = vmul.f32 %v205_v3, %v681_v54 }
  0x85   :  { %v210_v51 = vpop.permute.xlu1 %209  ;;  %v200_v56 = vpop.permute.xlu0 %199 }
  0x86   :  { %v273_v20 = vmul.f32 %v200_v56, %v679_v53  ;;  %v275_v25 = vmul.f32 %v210_v51, %v683_v55 }
  0x89   :  { %v220_v57 = vpop.permute.xlu1 %219  ;;  %v215_v58 = vpop.permute.xlu0 %214 }
  0x8a   :  { %v277_v18 = vmul.f32 %v220_v57, %v705_v2  ;;  %v276_v23 = vmul.f32 %v215_v58, %v703_v0 }
  0x8c   :  { %v289_v32 = vmax.f32 %v273_v20, %v277_v18  ;;  %v288_v36 = vmax.f32 %v272_v22, %v276_v23 }
  0x8d   :  { %v230_v59 = vpop.permute.xlu1 %229  ;;  %v225_v60 = vpop.permute.xlu0 %224 }
  0x8e   :  { %v279_v28 = vmul.f32 %v230_v59, %v725_v13  ;;  %v278_v14 = vmul.f32 %v225_v60, %v719_v8 }
  0x90   :  { %v291_v39 = vmax.f32 %v275_v25, %v279_v28  ;;  %v290_v43 = vmax.f32 %v274_v24, %v278_v14 }
  0x91   :  { %v240_v61 = vpop.permute.xlu0 %239 }
  0x92   :  { %v315_v19 = vpop.permute.xlu1 %314  ;;  %v281_v33 = vmul.f32 %v240_v61, %v747_v27 }
  0x93   :  { %v374_v42 = vmul.f32 %v315_v19, %v679_v53 }
  0x94   :  { %v293_v41 = vmax.f32 %v289_v32, %v281_v33 }
  0x95   :  { %v260_v62 = vpop.permute.xlu0 %259 }
  0x96   :  { %v319_v21 = vpop.permute.xlu1 %318  ;;  %v285_v3 = vmul.f32 %v260_v62, %v774_v40 }
  0x9a   :  { %v327_v63 = vpop.permute.xlu1 %326  ;;  %v311_v4 = vpop.permute.xlu0 %310 }
  0x9b   :  { %v377_v30 = vmul.f32 %v327_v63, %v703_v0  ;;  %v373_v46 = vmul.f32 %v311_v4, %v677_v52  ;;  %v375_v0 = vmul.f32 %v319_v21, %v681_v54  ;;  %v297_v63 = vmax.f32 %v293_v41, %v285_v3  ;;  %v412_v41 = vld [vmem:[#allocation3] sm:$0x3] }
  0x9d   :  { %v389_v59 = vmax.f32 %v373_v46, %v377_v30 }
  0x9e   :  { %v335_v5 = vpop.permute.xlu1 %334  ;;  %v323_v6 = vpop.permute.xlu0 %322 }
  0x9f   :  { %v376_v53 = vmul.f32 %v323_v6, %v683_v55  ;;  %v379_v58 = vmul.f32 %v335_v5, %v719_v8 }
  0xa1   :  { %v391_v21 = vmax.f32 %v375_v0, %v379_v58 }
  0xa2   :  { %v331_v9 = vpop.permute.xlu0 %330 }
  0xa3   :  { %v235_v7 = vpop.permute.xlu1 %234  ;;  %v378_v47 = vmul.f32 %v331_v9, %v705_v2 }
  0xa4   :  { %v280_v37 = vmul.f32 %v235_v7, %v745_v26 }
  0xa5   :  { %v390_v61 = vmax.f32 %v374_v42, %v378_v47  ;;  %v124_v47 = vld [vmem:[#allocation2] sm:$0x3] }
  0xa6   :  { %v339_v12 = vpop.permute.xlu0 %338  ;;  %v292_v49 = vmax.f32 %v288_v36, %v280_v37 }
  0xa7   :  { %v245_v1 = vpop.permute.xlu1 %244  ;;  %v380_v57 = vmul.f32 %v339_v12, %v725_v13 }
  0xa8   :  { %v282_v17 = vmul.f32 %v245_v1, %v757_v31 }
  0xa9   :  { %v392_v13 = vmax.f32 %v376_v53, %v380_v57 }
  0xaa   :  { %v343_v16 = vpop.permute.xlu0 %342  ;;  %v294_v52 = vmax.f32 %v290_v43, %v282_v17 }
  0xab   :  { %v250_v11 = vpop.permute.xlu1 %249  ;;  %v381_v19 = vmul.f32 %v343_v16, %v745_v26 }
  0xac   :  { %v283_v50 = vmul.f32 %v250_v11, %v764_v35 }
  0xad   :  { %v393_v1 = vmax.f32 %v389_v59, %v381_v19 }
  0xae   :  { %v355_v29 = vpop.permute.xlu0 %354  ;;  %v295_v4 = vmax.f32 %v291_v39, %v283_v50 }
  0xaf   :  { %v384_v54 = vmul.f32 %v355_v29, %v764_v35 }
  0xb0   :  { %v347_v15 = vpop.permute.xlu1 %346 }
  0xb1   :  { %v382_v60 = vmul.f32 %v347_v15, %v747_v27  ;;  %v396_v16 = vmax.f32 %v392_v13, %v384_v54 }
  0xb2   :  { %v359_v56 = vpop.permute.xlu0 %358 }
  0xb3   :  { %v394_v27 = vmax.f32 %v390_v61, %v382_v60  ;;  %v385_v11 = vmul.f32 %v359_v56, %v770_v38 }
  0xb4   :  { %v351_v10 = vpop.permute.xlu1 %350 }
  0xb5   :  { %v383_v9 = vmul.f32 %v351_v10, %v757_v31  ;;  %v397_v24 = vmax.f32 %v393_v1, %v385_v11 }
  0xb6   :  { %v371_v6 = vpop.permute.xlu0 %370 }
  0xb7   :  { %v388_v20 = vmul.f32 %v371_v6, %v786_v45  ;;  %v395_v35 = vmax.f32 %v391_v21, %v383_v9 }
  0xb9   :  { %v255_v34 = vpop.permute.xlu1 %254  ;;  %v400_v10 = vmax.f32 %v396_v16, %v388_v20 }
  0xba   :  { %v284_v51 = vmul.f32 %v255_v34, %v770_v38 }
  0xbc   :  { %v296_v7 = vmax.f32 %v292_v49, %v284_v51 }
  0xbd   :  { %v265_v48 = vpop.permute.xlu1 %264 }
  0xbe   :  { %v286_v2 = vmul.f32 %v265_v48, %v784_v44  ;;  %v300_v26 = vmax.f32 %v296_v7, %v297_v63 }
  0xc0   :  { %v298_v8 = vmax.f32 %v294_v52, %v286_v2 }
  0xc1   :  { %v270_v62 = vpop.permute.xlu1 %269 }
  0xc2   :  { %v287_v55 = vmul.f32 %v270_v62, %v786_v45 }
  0xc4   :  { %v299_v5 = vmax.f32 %v295_v4, %v287_v55 }
  0xc6   :  { %v301_v12 = vmax.f32 %v298_v8, %v299_v5  ;;  %v363_v15 = vpop.permute.xlu1 %362 }
  0xc7   :  { %v386_v18 = vmul.f32 %v363_v15, %v774_v40 }
  0xc8   :  { %v302_v22 = vmax.f32 %v300_v26, %v301_v12 }
  0xc9   :  { %v398_v23 = vmax.f32 %v394_v27, %v386_v18 }
  0xca   :  { %v303_v25 = vrot.slane %v302_v22, 4  ;;  %v367_v28 = vpop.permute.xlu1 %366 }
  0xcb   :  { %v387_v31 = vmul.f32 %v367_v28, %v784_v44  ;;  %v401_v29 = vmax.f32 %v397_v24, %v398_v23 }
  0xcc   :  { %v304_v14 = vmax.f32 %v302_v22, %v303_v25 }
  0xcd   :  { %v399_v38 = vmax.f32 %v395_v35, %v387_v31 }
  0xce   :  { %v305_v33 = vrot.slane %v304_v14, 2 }
  0xcf   :  { %v402_v32 = vmax.f32 %v399_v38, %v400_v10  ;;  %v423_v56 = vpop.permute.xlu1 %422 }
  0xd0   :  { %v306_v37 = vmax.f32 %v304_v14, %v305_v33 }
  0xd1   :  { %v403_v34 = vmax.f32 %v401_v29, %v402_v32 }
  0xd2   :  { %v307_v45 = vrot.slane %v306_v37, 1 }
  0xd3   :  { %v404_v36 = vrot.slane %v403_v34, 4 }
  0xd4   :  { %v308_v17 = vmax.f32 %v306_v37, %v307_v45 }
  0xd5   :  { %v405_v40 = vmax.f32 %v403_v34, %v404_v36 }
  0xd7   :  { %v406_v39 = vrot.slane %v405_v40, 2 }
  0xd9   :  { %v407_v42 = vmax.f32 %v405_v40, %v406_v39 }
  0xdb   :  { %v408_v43 = vrot.slane %v407_v42, 1 }
  0xdd   :  { %v409_v30 = vmax.f32 %v407_v42, %v408_v43 }
  0xdf   :  { %v411_v46 = vsel %vm410_vm1, %v308_v17, %v409_v30 }
  0xe0   :  { %v413_v44 = vmax.f32 %v412_v41, %v411_v46 }
  0xe2   :  { %414 = vst [vmem:[#allocation3] sm:$0x3] %v413_v44 }
  0xe9   :  { %v426_v0 = vld [vmem:[#allocation3] sm:$0x3] }
 0x116   :  { %v168_v48 = vpop.f32.mrb[0].mxu0 }
 0x117   :  { %v174_v49 = vadd.f32 %v168_v48, %v124_v47  ;;  %v481_v3 = vpop.f32.mrb[1].mxu0 }
 0x118   :  { %v171_v50 = vpop.f32.mrb[2].mxu0 }
 0x119   :  { %175 = vst [vmem:[#allocation2] sm:$0x3] %v174_v49  ;;  %v482_v51 = vpop.f32.mrb[3].mxu0 }
 0x120   :  { %v418_v53 = vld [vmem:[#allocation2] sm:$0x3] }
 0x121   :  { %v425_v57 = vmul.f32 %v423_v56, %v418_v53 }
 0x123   :  { %v429_v58 = vcombine.low %v425_v57, %v426_v0 }
 0x125   :  { %453 = vst.sshfl [vmem:[#allocation4] sm:$0x33 pattern:$0x76325410] %v429_v58 }
 0x126   :  { %511 = shalt.err (!%p508_p4)
}
 0x127   :  { %s512_s23 = scalar_lea.hbm %s860_s7, 64 }
 0x128   :  { %p513_p5 = scmp.ne.s32.totalorder %s860_s7, %s512_s23  ;;  %p516_p6 = scmp.lt.u32.totalorder %s512_s23, %s860_s7 }
 0x12a   :  { %p518_p7 = pnand %p516_p6, %p513_p5 }
 0x12c   :  { %521 = shalt.err (!%p518_p7)
}
 0x12d   :  { %448 = dma.vmem_to_hbm [thread:$0]  %s446_s5, 64, %s860_s7, [#allocation5]  }
 0x12e   :  { %522 = dma.done.wait [#allocation5], 64  }
 0x12f   :  { %523 = vsyncadd [#allocation5], 4294967232 }
 0x130   :  { %452 = vsyncpa [#allocation5], 1 }

</bundles_post_ra>
